<compile_context>
chip_gen: v7x
topology: tpu7x:2x2x1
jax: 0.10.0
libtpu: 0.0.40
codegen_flags: <defaults>
</compile_context>

<pallas_src>
import math
import jax
import jax.numpy as jnp
from jax.experimental import pallas as pl
from jax.experimental.pallas import tpu as pltpu  # noqa: F401  (TPU backend assumed)

# --- config (small, consistent with the module) ---
N_EMBD = 32
N_HEAD = 4
HEAD_DIM = N_EMBD // N_HEAD
LN_EPS = 1e-5
SEQ = 8
BATCH = 2

# --- packed-parameter slab layout (built once at init time) ---
LANE = 128
# weight slab w1: (C, 6*128) bf16; every block starts on a 128-lane boundary
W_QKV = 0 * LANE   # [m_wq*scale | m_wk | m_wv]   width 3C
W_MP  = 1 * LANE   # m_wp                          width C
W_CQ  = 2 * LANE   # c_wq*scale                    width C
W_CKV = 3 * LANE   # [c_wk | c_wv]                 width 2C
W_CP  = 4 * LANE   # c_wp                          width C
W_F1  = 5 * LANE   # f_w1                          width 4C
W1_COLS = 6 * LANE
# bias / LayerNorm slab: (16, 128) f32, one parameter per sublane row (lane-0 aligned)
B_MQKV, B_MP, B_CQ, B_CKV, B_CP, B_F1, B_F2 = 0, 1, 2, 3, 4, 5, 6
B_LN1G, B_LN1B, B_LN2G, B_LN2B, B_LN3G, B_LN3B = 7, 8, 9, 10, 11, 12
B_ROWS = 16


def _make_decoder_kernel(B, T, C, H):
    D = C // H
    BT = B * T
    bf16 = jnp.bfloat16
    f32 = jnp.float32

    def kernel(x_ref, enc_ref, w1_ref, w2_ref, b_ref, o_ref):
        x = x_ref[...]       # (B*T, C) f32
        enc = enc_ref[...]   # (B*T, C) f32

        # causal mask, built once as (B, T, T) (no modulo, no (B*H*T, T) slab)
        rows = jax.lax.broadcasted_iota(jnp.int32, (B, T, T), 1)
        cols = jax.lax.broadcasted_iota(jnp.int32, (B, T, T), 2)
        causal = cols <= rows

        def layernorm(z, g_row, b_row):
            g = b_ref[g_row, :C]
            bb = b_ref[b_row, :C]
            mu = jnp.mean(z, axis=-1, keepdims=True)
            ms = jnp.mean(z * z, axis=-1, keepdims=True)   # independent of mu
            var = ms - mu * mu
            return (z - mu) * jax.lax.rsqrt(var + LN_EPS) * g + bb

        def attend(qm, qo, km, ko, vm, vo, wp_col, bp_row, mask):
            """Multi-head attention with the output projection folded per head.
            qm/km/vm: f32 (B*T, _) activations; qo/ko/vo: column offset of head 0.
            Scores stay in the batched (B, T, T) layout the matmuls produce."""
            acc = None
            for h in range(H):
                qh = qm[:, qo + h * D: qo + (h + 1) * D].reshape(B, T, D).astype(bf16)
                kh = km[:, ko + h * D: ko + (h + 1) * D].reshape(B, T, D).astype(bf16)
                vh = vm[:, vo + h * D: vo + (h + 1) * D].reshape(B, T, D).astype(bf16)
                s = jnp.einsum('btd,bsd->bts', qh, kh,
                               preferred_element_type=f32)          # (B, T, T)
                if mask is not None:
                    s = jnp.where(mask, s, -jnp.inf)
                s = s - jnp.max(s, axis=-1, keepdims=True)
                p = jnp.exp(s)
                p = p * pl.reciprocal(jnp.sum(p, axis=-1, keepdims=True), approx=True)
                pv = jnp.einsum('bts,bsd->btd', p.astype(bf16), vh,
                                preferred_element_type=f32)          # (B, T, D)
                wph = w1_ref[h * D:(h + 1) * D, wp_col:wp_col + C]   # (D, C) bf16
                contrib = jnp.dot(pv.reshape(BT, D).astype(bf16), wph,
                                  preferred_element_type=f32)        # (B*T, C)
                acc = contrib if acc is None else acc + contrib
            return acc + b_ref[bp_row, :C]

        # 1) masked self-attention (fused QKV matmul, 1/sqrt(D) pre-folded into Q) + LN1
        qkv = jnp.dot(x.astype(bf16), w1_ref[:, W_QKV:W_QKV + 3 * C],
                      preferred_element_type=f32) + b_ref[B_MQKV, :3 * C]   # (B*T, 3C)
        y1 = attend(qkv, 0, qkv, C, qkv, 2 * C, W_MP, B_MP, causal)
        x1 = layernorm(y1 + x, B_LN1G, B_LN1B)

        # 2) encoder-decoder attention (fused KV matmul) + residual + LN2
        q2 = jnp.dot(x1.astype(bf16), w1_ref[:, W_CQ:W_CQ + C],
                     preferred_element_type=f32) + b_ref[B_CQ, :C]
        kv2 = jnp.dot(enc.astype(bf16), w1_ref[:, W_CKV:W_CKV + 2 * C],
                      preferred_element_type=f32) + b_ref[B_CKV, :2 * C]
        y2 = attend(q2, 0, kv2, 0, kv2, C, W_CP, B_CP, None)
        x2 = layernorm(y2 + x1, B_LN2G, B_LN2B)

        # 3) feed-forward (Linear -> exact GELU -> Linear) + residual + LN3
        h1 = jnp.dot(x2.astype(bf16), w1_ref[:, W_F1:W_F1 + 4 * C],
                     preferred_element_type=f32) + b_ref[B_F1, :4 * C]
        h1 = 0.5 * h1 * (1.0 + jax.lax.erf(h1 * (1.0 / math.sqrt(2.0))))  # exact GELU
        ff = jnp.dot(h1.astype(bf16), w2_ref[...],
                     preferred_element_type=f32) + b_ref[B_F2, :C]
        x3 = layernorm(ff + x2, B_LN3G, B_LN3B)

        o_ref[...] = x3

    return kernel


@jax.jit
def decoder_forward(x, enc_out, w1, w2, bias):
    B, T, C = x.shape
    out = pl.pallas_call(
        _make_decoder_kernel(B, T, C, N_HEAD),
        out_shape=jax.ShapeDtypeStruct((B * T, C), jnp.float32),
        # no grid: single program; total resident footprint is ~150 KB of VMEM
    )(x.reshape(B * T, C), enc_out.reshape(B * T, C), w1, w2, bias)
    return out.reshape(B, T, C)


# ----------------- deterministic parameter init (PyTorch-like) -----------------
def _linear(key, fan_in, fan_out):
    k1, k2 = jax.random.split(key)
    bound = 1.0 / math.sqrt(fan_in)
    w = jax.random.uniform(k1, (fan_in, fan_out), jnp.float32, -bound, bound)
    b = jax.random.uniform(k2, (1, fan_out), jnp.float32, -bound, bound)
    return w, b


def init_params(key):
    p = {}
    keys = iter(jax.random.split(key, 16))
    for pre in ("m", "c"):
        for name in ("q", "k", "v", "p"):
            w, b = _linear(next(keys), N_EMBD, N_EMBD)
            p[f"{pre}_w{name}"] = w
            p[f"{pre}_b{name}"] = b
    for i in (1, 2, 3):
        p[f"ln{i}_g"] = jnp.ones((1, N_EMBD), jnp.float32)
        p[f"ln{i}_b"] = jnp.zeros((1, N_EMBD), jnp.float32)
    p["f_w1"], p["f_b1"] = _linear(next(keys), N_EMBD, 4 * N_EMBD)
    p["f_w2"], p["f_b2"] = _linear(next(keys), 4 * N_EMBD, N_EMBD)
    return p


def pack_params(p):
    """One-off, init-time packing into the 3 slabs the kernel consumes:
       * w1  : (C, 6*128) bf16, 128-lane-aligned weight blocks, 1/sqrt(D) folded into Q
       * w2  : (4C, C) bf16 (second FFN weight)
       * bias: (16, 128) f32, one bias / LN parameter per sublane row
    """
    scale = 1.0 / math.sqrt(HEAD_DIM)

    w1 = jnp.zeros((N_EMBD, W1_COLS), jnp.float32)

    def put_w(slab, col, w):
        return slab.at[:, col:col + w.shape[1]].set(w)

    w1 = put_w(w1, W_QKV, jnp.concatenate([p["m_wq"] * scale, p["m_wk"], p["m_wv"]], axis=1))
    w1 = put_w(w1, W_MP, p["m_wp"])
    w1 = put_w(w1, W_CQ, p["c_wq"] * scale)
    w1 = put_w(w1, W_CKV, jnp.concatenate([p["c_wk"], p["c_wv"]], axis=1))
    w1 = put_w(w1, W_CP, p["c_wp"])
    w1 = put_w(w1, W_F1, p["f_w1"])

    bias = jnp.zeros((B_ROWS, LANE), jnp.float32)

    def put_b(slab, row, v):
        return slab.at[row, :v.shape[1]].set(v[0])

    bias = put_b(bias, B_MQKV, jnp.concatenate([p["m_bq"] * scale, p["m_bk"], p["m_bv"]], axis=1))
    bias = put_b(bias, B_MP, p["m_bp"])
    bias = put_b(bias, B_CQ, p["c_bq"] * scale)
    bias = put_b(bias, B_CKV, jnp.concatenate([p["c_bk"], p["c_bv"]], axis=1))
    bias = put_b(bias, B_CP, p["c_bp"])
    bias = put_b(bias, B_F1, p["f_b1"])
    bias = put_b(bias, B_F2, p["f_b2"])
    bias = put_b(bias, B_LN1G, p["ln1_g"]); bias = put_b(bias, B_LN1B, p["ln1_b"])
    bias = put_b(bias, B_LN2G, p["ln2_g"]); bias = put_b(bias, B_LN2B, p["ln2_b"])
    bias = put_b(bias, B_LN3G, p["ln3_g"]); bias = put_b(bias, B_LN3B, p["ln3_b"])

    return {"w1": w1.astype(jnp.bfloat16),
            "w2": p["f_w2"].astype(jnp.bfloat16),
            "bias": bias}


# ----------------- pure-JAX reference for verification -----------------
def ref_decoder(x, enc, p):
    def mha(xq, xkv, pre, causal):
        B, T, C = xq.shape
        q = xq @ p[f"{pre}_wq"] + p[f"{pre}_bq"][0]
        k = xkv @ p[f"{pre}_wk"] + p[f"{pre}_bk"][0]
        v = xkv @ p[f"{pre}_wv"] + p[f"{pre}_bv"][0]
        q = q.reshape(B, T, N_HEAD, HEAD_DIM).transpose(0, 2, 1, 3)
        k = k.reshape(B, T, N_HEAD, HEAD_DIM).transpose(0, 2, 1, 3)
        v = v.reshape(B, T, N_HEAD, HEAD_DIM).transpose(0, 2, 1, 3)
        att = (q @ k.transpose(0, 1, 3, 2)) * (1.0 / math.sqrt(HEAD_DIM))
        if causal:
            mask = jnp.tril(jnp.ones((T, T), bool))
            att = jnp.where(mask, att, -jnp.inf)
        att = jax.nn.softmax(att, axis=-1)
        y = (att @ v).transpose(0, 2, 1, 3).reshape(B, T, C)
        return y @ p[f"{pre}_wp"] + p[f"{pre}_bp"][0]

    def ln(z, g, b):
        mu = z.mean(-1, keepdims=True)
        var = ((z - mu) ** 2).mean(-1, keepdims=True)
        return (z - mu) / jnp.sqrt(var + LN_EPS) * g[0] + b[0]

    x1 = ln(mha(x, x, "m", True) + x, p["ln1_g"], p["ln1_b"])
    x2 = ln(mha(x1, enc, "c", False) + x1, p["ln2_g"], p["ln2_b"])
    h = x2 @ p["f_w1"] + p["f_b1"][0]
    h = 0.5 * h * (1.0 + jax.lax.erf(h / math.sqrt(2.0)))
    ff = h @ p["f_w2"] + p["f_b2"][0]
    return ln(ff + x2, p["ln3_g"], p["ln3_b"])


if __name__ == "__main__":
    key = jax.random.PRNGKey(0)
    kx, ke, kp = jax.random.split(key, 3)
    x = jax.random.normal(kx, (BATCH, SEQ, N_EMBD), jnp.float32)
    enc_out = jax.random.normal(ke, (BATCH, SEQ, N_EMBD), jnp.float32)
    params = init_params(kp)
    packed = pack_params(params)   # one-off, init-time (not in the per-call path)

    out = decoder_forward(x, enc_out, packed["w1"], packed["w2"], packed["bias"])
    out = jax.block_until_ready(out)

    with jax.default_matmul_precision("highest"):
        ref = jax.block_until_ready(ref_decoder(x, enc_out, params))

    assert out.shape == (BATCH, SEQ, N_EMBD)
    assert jnp.all(jnp.isfinite(out))
    max_err = float(jnp.max(jnp.abs(out - ref)))
    assert jnp.allclose(out, ref, atol=2e-2, rtol=2e-2), max_err
    print("KERNEL_OK")
</pallas_src>

<mosaic_0001>
module attributes {stable_mosaic.version = 11 : i64} {
  func.func @kernel(%arg0: memref<16x32xf32, #tpu.memory_space<vmem>>, %arg1: memref<16x32xf32, #tpu.memory_space<vmem>>, %arg2: memref<32x768xbf16, #tpu.memory_space<vmem>>, %arg3: memref<128x32xbf16, #tpu.memory_space<vmem>>, %arg4: memref<16x128xf32, #tpu.memory_space<vmem>>, %arg5: memref<16x32xf32, #tpu.memory_space<vmem>>) attributes {dimension_semantics = [], scalar_prefetch = 0 : i64, scratch_operands = 0 : i64, tpu.core_type = #tpu.core_type<tc>} {
    %c0 = arith.constant 0 : index
    %c0_0 = arith.constant 0 : index
    %0 = vector.load %arg0[%c0, %c0_0] : memref<16x32xf32, #tpu.memory_space<vmem>>, vector<16x32xf32>
    %c0_1 = arith.constant 0 : index
    %c0_2 = arith.constant 0 : index
    %1 = vector.load %arg1[%c0_1, %c0_2] : memref<16x32xf32, #tpu.memory_space<vmem>>, vector<16x32xf32>
    %2 = tpu.iota {dimensions = array<i32: 1>} : vector<2x8x8xi32>
    %3 = tpu.iota {dimensions = array<i32: 2>} : vector<2x8x8xi32>
    %4 = arith.cmpi sle, %3, %2 : vector<2x8x8xi32>
    %5 = arith.truncf %0 : vector<16x32xf32> to vector<16x32xbf16>
    %c0_3 = arith.constant 0 : index
    %c0_4 = arith.constant 0 : index
    %6 = vector.load %arg2[%c0_3, %c0_4] : memref<32x768xbf16, #tpu.memory_space<vmem>>, vector<32x96xbf16>
    %cst = arith.constant dense<0.000000e+00> : vector<16x96xf32>
    %7 = tpu.matmul %5, %6, %cst {dimension_numbers = #tpu.dot_dimension_numbers<[1], [0], [0], [1], [0, 0, 1, 1], [], []>} : vector<16x32xbf16>, vector<32x96xbf16>, vector<16x96xf32> -> vector<16x96xf32>
    %c0_5 = arith.constant 0 : index
    %c0_6 = arith.constant 0 : index
    %8 = vector.load %arg4[%c0_5, %c0_6] : memref<16x128xf32, #tpu.memory_space<vmem>>, vector<1x96xf32>
    %9 = vector.shape_cast %8 : vector<1x96xf32> to vector<96xf32>
    %10 = vector.shape_cast %9 : vector<96xf32> to vector<1x96xf32>
    %11 = vector.broadcast %10 : vector<1x96xf32> to vector<16x96xf32>
    %12 = arith.addf %7, %11 : vector<16x96xf32>
    %13 = vector.extract_strided_slice %12 {offsets = [0, 0], sizes = [16, 8], strides = [1, 1]} : vector<16x96xf32> to vector<16x8xf32>
    %14 = vector.shape_cast %13 : vector<16x8xf32> to vector<2x8x8xf32>
    %15 = arith.truncf %14 : vector<2x8x8xf32> to vector<2x8x8xbf16>
    %16 = vector.extract_strided_slice %12 {offsets = [0, 32], sizes = [16, 8], strides = [1, 1]} : vector<16x96xf32> to vector<16x8xf32>
    %17 = vector.shape_cast %16 : vector<16x8xf32> to vector<2x8x8xf32>
    %18 = arith.truncf %17 : vector<2x8x8xf32> to vector<2x8x8xbf16>
    %19 = vector.extract_strided_slice %12 {offsets = [0, 64], sizes = [16, 8], strides = [1, 1]} : vector<16x96xf32> to vector<16x8xf32>
    %20 = vector.shape_cast %19 : vector<16x8xf32> to vector<2x8x8xf32>
    %21 = arith.truncf %20 : vector<2x8x8xf32> to vector<2x8x8xbf16>
    "tpu.trace_start"() <{level = 10 : i32, message = "btd,bsd->bts"}> : () -> ()
    %cst_7 = arith.constant dense<0.000000e+00> : vector<2x8x8xf32>
    %22 = tpu.matmul %15, %18, %cst_7 {dimension_numbers = #tpu.dot_dimension_numbers<[2], [2], [1], [1], [0, 0, 0, 1, 1, 1], [0], [0]>} : vector<2x8x8xbf16>, vector<2x8x8xbf16>, vector<2x8x8xf32> -> vector<2x8x8xf32>
    %cst_8 = arith.constant 0xFF800000 : f32
    "tpu.trace_stop"() : () -> ()
    %23 = vector.broadcast %cst_8 : f32 to vector<2x8x8xf32>
    %24 = arith.select %4, %22, %23 : vector<2x8x8xi1>, vector<2x8x8xf32>
    %cst_9 = arith.constant dense<0xFF800000> : vector<2x8xf32>
    %25 = vector.multi_reduction <maximumf>, %24, %cst_9 [2] : vector<2x8x8xf32> to vector<2x8xf32>
    %26 = vector.shape_cast %25 : vector<2x8xf32> to vector<2x8x1xf32>
    %27 = vector.broadcast %26 : vector<2x8x1xf32> to vector<2x8x8xf32>
    %28 = arith.subf %24, %27 : vector<2x8x8xf32>
    %29 = math.exp %28 : vector<2x8x8xf32>
    %cst_10 = arith.constant dense<0.000000e+00> : vector<2x8xf32>
    %30 = vector.multi_reduction <add>, %29, %cst_10 [2] : vector<2x8x8xf32> to vector<2x8xf32>
    %31 = vector.shape_cast %30 : vector<2x8xf32> to vector<2x8x1xf32>
    %32 = tpu.reciprocal %31 {approx = true} : vector<2x8x1xf32> -> vector<2x8x1xf32>
    %33 = vector.broadcast %32 : vector<2x8x1xf32> to vector<2x8x8xf32>
    %34 = arith.mulf %29, %33 : vector<2x8x8xf32>
    %35 = arith.truncf %34 : vector<2x8x8xf32> to vector<2x8x8xbf16>
    "tpu.trace_start"() <{level = 10 : i32, message = "bts,bsd->btd"}> : () -> ()
    %cst_11 = arith.constant dense<0.000000e+00> : vector<2x8x8xf32>
    %36 = tpu.matmul %35, %21, %cst_11 {dimension_numbers = #tpu.dot_dimension_numbers<[2], [1], [1], [2], [0, 0, 0, 1, 1, 2], [0], [0]>} : vector<2x8x8xbf16>, vector<2x8x8xbf16>, vector<2x8x8xf32> -> vector<2x8x8xf32>
    "tpu.trace_stop"() : () -> ()
    %c0_12 = arith.constant 0 : index
    %c128 = arith.constant 128 : index
    %37 = vector.load %arg2[%c0_12, %c128] : memref<32x768xbf16, #tpu.memory_space<vmem>>, vector<8x32xbf16>
    %38 = vector.shape_cast %36 : vector<2x8x8xf32> to vector<16x8xf32>
    %39 = arith.truncf %38 : vector<16x8xf32> to vector<16x8xbf16>
    %cst_13 = arith.constant dense<0.000000e+00> : vector<16x32xf32>
    %40 = tpu.matmul %39, %37, %cst_13 {dimension_numbers = #tpu.dot_dimension_numbers<[1], [0], [0], [1], [0, 0, 1, 1], [], []>} : vector<16x8xbf16>, vector<8x32xbf16>, vector<16x32xf32> -> vector<16x32xf32>
    %41 = vector.extract_strided_slice %12 {offsets = [0, 8], sizes = [16, 8], strides = [1, 1]} : vector<16x96xf32> to vector<16x8xf32>
    %42 = vector.shape_cast %41 : vector<16x8xf32> to vector<2x8x8xf32>
    %43 = arith.truncf %42 : vector<2x8x8xf32> to vector<2x8x8xbf16>
    %44 = vector.extract_strided_slice %12 {offsets = [0, 40], sizes = [16, 8], strides = [1, 1]} : vector<16x96xf32> to vector<16x8xf32>
    %45 = vector.shape_cast %44 : vector<16x8xf32> to vector<2x8x8xf32>
    %46 = arith.truncf %45 : vector<2x8x8xf32> to vector<2x8x8xbf16>
    %47 = vector.extract_strided_slice %12 {offsets = [0, 72], sizes = [16, 8], strides = [1, 1]} : vector<16x96xf32> to vector<16x8xf32>
    %48 = vector.shape_cast %47 : vector<16x8xf32> to vector<2x8x8xf32>
    %49 = arith.truncf %48 : vector<2x8x8xf32> to vector<2x8x8xbf16>
    "tpu.trace_start"() <{level = 10 : i32, message = "btd,bsd->bts"}> : () -> ()
    %cst_14 = arith.constant dense<0.000000e+00> : vector<2x8x8xf32>
    %50 = tpu.matmul %43, %46, %cst_14 {dimension_numbers = #tpu.dot_dimension_numbers<[2], [2], [1], [1], [0, 0, 0, 1, 1, 1], [0], [0]>} : vector<2x8x8xbf16>, vector<2x8x8xbf16>, vector<2x8x8xf32> -> vector<2x8x8xf32>
    %cst_15 = arith.constant 0xFF800000 : f32
    "tpu.trace_stop"() : () -> ()
    %51 = vector.broadcast %cst_15 : f32 to vector<2x8x8xf32>
    %52 = arith.select %4, %50, %51 : vector<2x8x8xi1>, vector<2x8x8xf32>
    %cst_16 = arith.constant dense<0xFF800000> : vector<2x8xf32>
    %53 = vector.multi_reduction <maximumf>, %52, %cst_16 [2] : vector<2x8x8xf32> to vector<2x8xf32>
    %54 = vector.shape_cast %53 : vector<2x8xf32> to vector<2x8x1xf32>
    %55 = vector.broadcast %54 : vector<2x8x1xf32> to vector<2x8x8xf32>
    %56 = arith.subf %52, %55 : vector<2x8x8xf32>
    %57 = math.exp %56 : vector<2x8x8xf32>
    %cst_17 = arith.constant dense<0.000000e+00> : vector<2x8xf32>
    %58 = vector.multi_reduction <add>, %57, %cst_17 [2] : vector<2x8x8xf32> to vector<2x8xf32>
    %59 = vector.shape_cast %58 : vector<2x8xf32> to vector<2x8x1xf32>
    %60 = tpu.reciprocal %59 {approx = true} : vector<2x8x1xf32> -> vector<2x8x1xf32>
    %61 = vector.broadcast %60 : vector<2x8x1xf32> to vector<2x8x8xf32>
    %62 = arith.mulf %57, %61 : vector<2x8x8xf32>
    %63 = arith.truncf %62 : vector<2x8x8xf32> to vector<2x8x8xbf16>
    "tpu.trace_start"() <{level = 10 : i32, message = "bts,bsd->btd"}> : () -> ()
    %cst_18 = arith.constant dense<0.000000e+00> : vector<2x8x8xf32>
    %64 = tpu.matmul %63, %49, %cst_18 {dimension_numbers = #tpu.dot_dimension_numbers<[2], [1], [1], [2], [0, 0, 0, 1, 1, 2], [0], [0]>} : vector<2x8x8xbf16>, vector<2x8x8xbf16>, vector<2x8x8xf32> -> vector<2x8x8xf32>
    "tpu.trace_stop"() : () -> ()
    %c8 = arith.constant 8 : index
    %c128_19 = arith.constant 128 : index
    %65 = vector.load %arg2[%c8, %c128_19] : memref<32x768xbf16, #tpu.memory_space<vmem>>, vector<8x32xbf16>
    %66 = vector.shape_cast %64 : vector<2x8x8xf32> to vector<16x8xf32>
    %67 = arith.truncf %66 : vector<16x8xf32> to vector<16x8xbf16>
    %cst_20 = arith.constant dense<0.000000e+00> : vector<16x32xf32>
    %68 = tpu.matmul %67, %65, %cst_20 {dimension_numbers = #tpu.dot_dimension_numbers<[1], [0], [0], [1], [0, 0, 1, 1], [], []>} : vector<16x8xbf16>, vector<8x32xbf16>, vector<16x32xf32> -> vector<16x32xf32>
    %69 = arith.addf %40, %68 : vector<16x32xf32>
    %70 = vector.extract_strided_slice %12 {offsets = [0, 16], sizes = [16, 8], strides = [1, 1]} : vector<16x96xf32> to vector<16x8xf32>
    %71 = vector.shape_cast %70 : vector<16x8xf32> to vector<2x8x8xf32>
    %72 = arith.truncf %71 : vector<2x8x8xf32> to vector<2x8x8xbf16>
    %73 = vector.extract_strided_slice %12 {offsets = [0, 48], sizes = [16, 8], strides = [1, 1]} : vector<16x96xf32> to vector<16x8xf32>
    %74 = vector.shape_cast %73 : vector<16x8xf32> to vector<2x8x8xf32>
    %75 = arith.truncf %74 : vector<2x8x8xf32> to vector<2x8x8xbf16>
    %76 = vector.extract_strided_slice %12 {offsets = [0, 80], sizes = [16, 8], strides = [1, 1]} : vector<16x96xf32> to vector<16x8xf32>
    %77 = vector.shape_cast %76 : vector<16x8xf32> to vector<2x8x8xf32>
    %78 = arith.truncf %77 : vector<2x8x8xf32> to vector<2x8x8xbf16>
    "tpu.trace_start"() <{level = 10 : i32, message = "btd,bsd->bts"}> : () -> ()
    %cst_21 = arith.constant dense<0.000000e+00> : vector<2x8x8xf32>
    %79 = tpu.matmul %72, %75, %cst_21 {dimension_numbers = #tpu.dot_dimension_numbers<[2], [2], [1], [1], [0, 0, 0, 1, 1, 1], [0], [0]>} : vector<2x8x8xbf16>, vector<2x8x8xbf16>, vector<2x8x8xf32> -> vector<2x8x8xf32>
    %cst_22 = arith.constant 0xFF800000 : f32
    "tpu.trace_stop"() : () -> ()
    %80 = vector.broadcast %cst_22 : f32 to vector<2x8x8xf32>
    %81 = arith.select %4, %79, %80 : vector<2x8x8xi1>, vector<2x8x8xf32>
    %cst_23 = arith.constant dense<0xFF800000> : vector<2x8xf32>
    %82 = vector.multi_reduction <maximumf>, %81, %cst_23 [2] : vector<2x8x8xf32> to vector<2x8xf32>
    %83 = vector.shape_cast %82 : vector<2x8xf32> to vector<2x8x1xf32>
    %84 = vector.broadcast %83 : vector<2x8x1xf32> to vector<2x8x8xf32>
    %85 = arith.subf %81, %84 : vector<2x8x8xf32>
    %86 = math.exp %85 : vector<2x8x8xf32>
    %cst_24 = arith.constant dense<0.000000e+00> : vector<2x8xf32>
    %87 = vector.multi_reduction <add>, %86, %cst_24 [2] : vector<2x8x8xf32> to vector<2x8xf32>
    %88 = vector.shape_cast %87 : vector<2x8xf32> to vector<2x8x1xf32>
    %89 = tpu.reciprocal %88 {approx = true} : vector<2x8x1xf32> -> vector<2x8x1xf32>
    %90 = vector.broadcast %89 : vector<2x8x1xf32> to vector<2x8x8xf32>
    %91 = arith.mulf %86, %90 : vector<2x8x8xf32>
    %92 = arith.truncf %91 : vector<2x8x8xf32> to vector<2x8x8xbf16>
    "tpu.trace_start"() <{level = 10 : i32, message = "bts,bsd->btd"}> : () -> ()
    %cst_25 = arith.constant dense<0.000000e+00> : vector<2x8x8xf32>
    %93 = tpu.matmul %92, %78, %cst_25 {dimension_numbers = #tpu.dot_dimension_numbers<[2], [1], [1], [2], [0, 0, 0, 1, 1, 2], [0], [0]>} : vector<2x8x8xbf16>, vector<2x8x8xbf16>, vector<2x8x8xf32> -> vector<2x8x8xf32>
    "tpu.trace_stop"() : () -> ()
    %c16 = arith.constant 16 : index
    %c128_26 = arith.constant 128 : index
    %94 = vector.load %arg2[%c16, %c128_26] : memref<32x768xbf16, #tpu.memory_space<vmem>>, vector<8x32xbf16>
    %95 = vector.shape_cast %93 : vector<2x8x8xf32> to vector<16x8xf32>
    %96 = arith.truncf %95 : vector<16x8xf32> to vector<16x8xbf16>
    %cst_27 = arith.constant dense<0.000000e+00> : vector<16x32xf32>
    %97 = tpu.matmul %96, %94, %cst_27 {dimension_numbers = #tpu.dot_dimension_numbers<[1], [0], [0], [1], [0, 0, 1, 1], [], []>} : vector<16x8xbf16>, vector<8x32xbf16>, vector<16x32xf32> -> vector<16x32xf32>
    %98 = arith.addf %69, %97 : vector<16x32xf32>
    %99 = vector.extract_strided_slice %12 {offsets = [0, 24], sizes = [16, 8], strides = [1, 1]} : vector<16x96xf32> to vector<16x8xf32>
    %100 = vector.shape_cast %99 : vector<16x8xf32> to vector<2x8x8xf32>
    %101 = arith.truncf %100 : vector<2x8x8xf32> to vector<2x8x8xbf16>
    %102 = vector.extract_strided_slice %12 {offsets = [0, 56], sizes = [16, 8], strides = [1, 1]} : vector<16x96xf32> to vector<16x8xf32>
    %103 = vector.shape_cast %102 : vector<16x8xf32> to vector<2x8x8xf32>
    %104 = arith.truncf %103 : vector<2x8x8xf32> to vector<2x8x8xbf16>
    %105 = vector.extract_strided_slice %12 {offsets = [0, 88], sizes = [16, 8], strides = [1, 1]} : vector<16x96xf32> to vector<16x8xf32>
    %106 = vector.shape_cast %105 : vector<16x8xf32> to vector<2x8x8xf32>
    %107 = arith.truncf %106 : vector<2x8x8xf32> to vector<2x8x8xbf16>
    "tpu.trace_start"() <{level = 10 : i32, message = "btd,bsd->bts"}> : () -> ()
    %cst_28 = arith.constant dense<0.000000e+00> : vector<2x8x8xf32>
    %108 = tpu.matmul %101, %104, %cst_28 {dimension_numbers = #tpu.dot_dimension_numbers<[2], [2], [1], [1], [0, 0, 0, 1, 1, 1], [0], [0]>} : vector<2x8x8xbf16>, vector<2x8x8xbf16>, vector<2x8x8xf32> -> vector<2x8x8xf32>
    %cst_29 = arith.constant 0xFF800000 : f32
    "tpu.trace_stop"() : () -> ()
    %109 = vector.broadcast %cst_29 : f32 to vector<2x8x8xf32>
    %110 = arith.select %4, %108, %109 : vector<2x8x8xi1>, vector<2x8x8xf32>
    %cst_30 = arith.constant dense<0xFF800000> : vector<2x8xf32>
    %111 = vector.multi_reduction <maximumf>, %110, %cst_30 [2] : vector<2x8x8xf32> to vector<2x8xf32>
    %112 = vector.shape_cast %111 : vector<2x8xf32> to vector<2x8x1xf32>
    %113 = vector.broadcast %112 : vector<2x8x1xf32> to vector<2x8x8xf32>
    %114 = arith.subf %110, %113 : vector<2x8x8xf32>
    %115 = math.exp %114 : vector<2x8x8xf32>
    %cst_31 = arith.constant dense<0.000000e+00> : vector<2x8xf32>
    %116 = vector.multi_reduction <add>, %115, %cst_31 [2] : vector<2x8x8xf32> to vector<2x8xf32>
    %117 = vector.shape_cast %116 : vector<2x8xf32> to vector<2x8x1xf32>
    %118 = tpu.reciprocal %117 {approx = true} : vector<2x8x1xf32> -> vector<2x8x1xf32>
    %119 = vector.broadcast %118 : vector<2x8x1xf32> to vector<2x8x8xf32>
    %120 = arith.mulf %115, %119 : vector<2x8x8xf32>
    %121 = arith.truncf %120 : vector<2x8x8xf32> to vector<2x8x8xbf16>
    "tpu.trace_start"() <{level = 10 : i32, message = "bts,bsd->btd"}> : () -> ()
    %cst_32 = arith.constant dense<0.000000e+00> : vector<2x8x8xf32>
    %122 = tpu.matmul %121, %107, %cst_32 {dimension_numbers = #tpu.dot_dimension_numbers<[2], [1], [1], [2], [0, 0, 0, 1, 1, 2], [0], [0]>} : vector<2x8x8xbf16>, vector<2x8x8xbf16>, vector<2x8x8xf32> -> vector<2x8x8xf32>
    "tpu.trace_stop"() : () -> ()
    %c24 = arith.constant 24 : index
    %c128_33 = arith.constant 128 : index
    %123 = vector.load %arg2[%c24, %c128_33] : memref<32x768xbf16, #tpu.memory_space<vmem>>, vector<8x32xbf16>
    %124 = vector.shape_cast %122 : vector<2x8x8xf32> to vector<16x8xf32>
    %125 = arith.truncf %124 : vector<16x8xf32> to vector<16x8xbf16>
    %cst_34 = arith.constant dense<0.000000e+00> : vector<16x32xf32>
    %126 = tpu.matmul %125, %123, %cst_34 {dimension_numbers = #tpu.dot_dimension_numbers<[1], [0], [0], [1], [0, 0, 1, 1], [], []>} : vector<16x8xbf16>, vector<8x32xbf16>, vector<16x32xf32> -> vector<16x32xf32>
    %127 = arith.addf %98, %126 : vector<16x32xf32>
    %c1 = arith.constant 1 : index
    %c0_35 = arith.constant 0 : index
    %128 = vector.load %arg4[%c1, %c0_35] : memref<16x128xf32, #tpu.memory_space<vmem>>, vector<1x32xf32>
    %129 = vector.shape_cast %128 : vector<1x32xf32> to vector<32xf32>
    %130 = vector.shape_cast %129 : vector<32xf32> to vector<1x32xf32>
    %131 = vector.broadcast %130 : vector<1x32xf32> to vector<16x32xf32>
    %132 = arith.addf %127, %131 : vector<16x32xf32>
    %133 = arith.addf %132, %0 : vector<16x32xf32>
    %c7 = arith.constant 7 : index
    %c0_36 = arith.constant 0 : index
    %134 = vector.load %arg4[%c7, %c0_36] : memref<16x128xf32, #tpu.memory_space<vmem>>, vector<1x32xf32>
    %135 = vector.shape_cast %134 : vector<1x32xf32> to vector<32xf32>
    %c8_37 = arith.constant 8 : index
    %c0_38 = arith.constant 0 : index
    %136 = vector.load %arg4[%c8_37, %c0_38] : memref<16x128xf32, #tpu.memory_space<vmem>>, vector<1x32xf32>
    %137 = vector.shape_cast %136 : vector<1x32xf32> to vector<32xf32>
    %cst_39 = arith.constant dense<0.000000e+00> : vector<16xf32>
    %138 = vector.multi_reduction <add>, %133, %cst_39 [1] : vector<16x32xf32> to vector<16xf32>
    %139 = vector.shape_cast %138 : vector<16xf32> to vector<16x1xf32>
    %cst_40 = arith.constant 3.200000e+01 : f32
    %140 = vector.broadcast %cst_40 : f32 to vector<16x1xf32>
    %141 = arith.divf %139, %140 : vector<16x1xf32>
    %142 = arith.mulf %133, %133 : vector<16x32xf32>
    %cst_41 = arith.constant dense<0.000000e+00> : vector<16xf32>
    %143 = vector.multi_reduction <add>, %142, %cst_41 [1] : vector<16x32xf32> to vector<16xf32>
    %144 = vector.shape_cast %143 : vector<16xf32> to vector<16x1xf32>
    %cst_42 = arith.constant 3.200000e+01 : f32
    %145 = vector.broadcast %cst_42 : f32 to vector<16x1xf32>
    %146 = arith.divf %144, %145 : vector<16x1xf32>
    %147 = arith.mulf %141, %141 : vector<16x1xf32>
    %148 = arith.subf %146, %147 : vector<16x1xf32>
    %149 = vector.broadcast %141 : vector<16x1xf32> to vector<16x32xf32>
    %150 = arith.subf %133, %149 : vector<16x32xf32>
    %cst_43 = arith.constant 9.99999974E-6 : f32
    %151 = vector.broadcast %cst_43 : f32 to vector<16x1xf32>
    %152 = arith.addf %148, %151 : vector<16x1xf32>
    %153 = math.rsqrt %152 : vector<16x1xf32>
    %154 = vector.broadcast %153 : vector<16x1xf32> to vector<16x32xf32>
    %155 = arith.mulf %150, %154 : vector<16x32xf32>
    %156 = vector.shape_cast %135 : vector<32xf32> to vector<1x32xf32>
    %157 = vector.broadcast %156 : vector<1x32xf32> to vector<16x32xf32>
    %158 = arith.mulf %155, %157 : vector<16x32xf32>
    %159 = vector.shape_cast %137 : vector<32xf32> to vector<1x32xf32>
    %160 = vector.broadcast %159 : vector<1x32xf32> to vector<16x32xf32>
    %161 = arith.addf %158, %160 : vector<16x32xf32>
    %162 = arith.truncf %161 : vector<16x32xf32> to vector<16x32xbf16>
    %c0_44 = arith.constant 0 : index
    %c256 = arith.constant 256 : index
    %163 = vector.load %arg2[%c0_44, %c256] : memref<32x768xbf16, #tpu.memory_space<vmem>>, vector<32x32xbf16>
    %cst_45 = arith.constant dense<0.000000e+00> : vector<16x32xf32>
    %164 = tpu.matmul %162, %163, %cst_45 {dimension_numbers = #tpu.dot_dimension_numbers<[1], [0], [0], [1], [0, 0, 1, 1], [], []>} : vector<16x32xbf16>, vector<32x32xbf16>, vector<16x32xf32> -> vector<16x32xf32>
    %c2 = arith.constant 2 : index
    %c0_46 = arith.constant 0 : index
    %165 = vector.load %arg4[%c2, %c0_46] : memref<16x128xf32, #tpu.memory_space<vmem>>, vector<1x32xf32>
    %166 = vector.shape_cast %165 : vector<1x32xf32> to vector<32xf32>
    %167 = vector.shape_cast %166 : vector<32xf32> to vector<1x32xf32>
    %168 = vector.broadcast %167 : vector<1x32xf32> to vector<16x32xf32>
    %169 = arith.addf %164, %168 : vector<16x32xf32>
    %170 = arith.truncf %1 : vector<16x32xf32> to vector<16x32xbf16>
    %c0_47 = arith.constant 0 : index
    %c384 = arith.constant 384 : index
    %171 = vector.load %arg2[%c0_47, %c384] : memref<32x768xbf16, #tpu.memory_space<vmem>>, vector<32x64xbf16>
    %cst_48 = arith.constant dense<0.000000e+00> : vector<16x64xf32>
    %172 = tpu.matmul %170, %171, %cst_48 {dimension_numbers = #tpu.dot_dimension_numbers<[1], [0], [0], [1], [0, 0, 1, 1], [], []>} : vector<16x32xbf16>, vector<32x64xbf16>, vector<16x64xf32> -> vector<16x64xf32>
    %c3 = arith.constant 3 : index
    %c0_49 = arith.constant 0 : index
    %173 = vector.load %arg4[%c3, %c0_49] : memref<16x128xf32, #tpu.memory_space<vmem>>, vector<1x64xf32>
    %174 = vector.shape_cast %173 : vector<1x64xf32> to vector<64xf32>
    %175 = vector.shape_cast %174 : vector<64xf32> to vector<1x64xf32>
    %176 = vector.broadcast %175 : vector<1x64xf32> to vector<16x64xf32>
    %177 = arith.addf %172, %176 : vector<16x64xf32>
    %178 = vector.extract_strided_slice %169 {offsets = [0, 0], sizes = [16, 8], strides = [1, 1]} : vector<16x32xf32> to vector<16x8xf32>
    %179 = vector.shape_cast %178 : vector<16x8xf32> to vector<2x8x8xf32>
    %180 = arith.truncf %179 : vector<2x8x8xf32> to vector<2x8x8xbf16>
    %181 = vector.extract_strided_slice %177 {offsets = [0, 0], sizes = [16, 8], strides = [1, 1]} : vector<16x64xf32> to vector<16x8xf32>
    %182 = vector.shape_cast %181 : vector<16x8xf32> to vector<2x8x8xf32>
    %183 = arith.truncf %182 : vector<2x8x8xf32> to vector<2x8x8xbf16>
    %184 = vector.extract_strided_slice %177 {offsets = [0, 32], sizes = [16, 8], strides = [1, 1]} : vector<16x64xf32> to vector<16x8xf32>
    %185 = vector.shape_cast %184 : vector<16x8xf32> to vector<2x8x8xf32>
    %186 = arith.truncf %185 : vector<2x8x8xf32> to vector<2x8x8xbf16>
    "tpu.trace_start"() <{level = 10 : i32, message = "btd,bsd->bts"}> : () -> ()
    %cst_50 = arith.constant dense<0.000000e+00> : vector<2x8x8xf32>
    %187 = tpu.matmul %180, %183, %cst_50 {dimension_numbers = #tpu.dot_dimension_numbers<[2], [2], [1], [1], [0, 0, 0, 1, 1, 1], [0], [0]>} : vector<2x8x8xbf16>, vector<2x8x8xbf16>, vector<2x8x8xf32> -> vector<2x8x8xf32>
    "tpu.trace_stop"() : () -> ()
    %cst_51 = arith.constant dense<0xFF800000> : vector<2x8xf32>
    %188 = vector.multi_reduction <maximumf>, %187, %cst_51 [2] : vector<2x8x8xf32> to vector<2x8xf32>
    %189 = vector.shape_cast %188 : vector<2x8xf32> to vector<2x8x1xf32>
    %190 = vector.broadcast %189 : vector<2x8x1xf32> to vector<2x8x8xf32>
    %191 = arith.subf %187, %190 : vector<2x8x8xf32>
    %192 = math.exp %191 : vector<2x8x8xf32>
    %cst_52 = arith.constant dense<0.000000e+00> : vector<2x8xf32>
    %193 = vector.multi_reduction <add>, %192, %cst_52 [2] : vector<2x8x8xf32> to vector<2x8xf32>
    %194 = vector.shape_cast %193 : vector<2x8xf32> to vector<2x8x1xf32>
    %195 = tpu.reciprocal %194 {approx = true} : vector<2x8x1xf32> -> vector<2x8x1xf32>
    %196 = vector.broadcast %195 : vector<2x8x1xf32> to vector<2x8x8xf32>
    %197 = arith.mulf %192, %196 : vector<2x8x8xf32>
    %198 = arith.truncf %197 : vector<2x8x8xf32> to vector<2x8x8xbf16>
    "tpu.trace_start"() <{level = 10 : i32, message = "bts,bsd->btd"}> : () -> ()
    %cst_53 = arith.constant dense<0.000000e+00> : vector<2x8x8xf32>
    %199 = tpu.matmul %198, %186, %cst_53 {dimension_numbers = #tpu.dot_dimension_numbers<[2], [1], [1], [2], [0, 0, 0, 1, 1, 2], [0], [0]>} : vector<2x8x8xbf16>, vector<2x8x8xbf16>, vector<2x8x8xf32> -> vector<2x8x8xf32>
    "tpu.trace_stop"() : () -> ()
    %c0_54 = arith.constant 0 : index
    %c512 = arith.constant 512 : index
    %200 = vector.load %arg2[%c0_54, %c512] : memref<32x768xbf16, #tpu.memory_space<vmem>>, vector<8x32xbf16>
    %201 = vector.shape_cast %199 : vector<2x8x8xf32> to vector<16x8xf32>
    %202 = arith.truncf %201 : vector<16x8xf32> to vector<16x8xbf16>
    %cst_55 = arith.constant dense<0.000000e+00> : vector<16x32xf32>
    %203 = tpu.matmul %202, %200, %cst_55 {dimension_numbers = #tpu.dot_dimension_numbers<[1], [0], [0], [1], [0, 0, 1, 1], [], []>} : vector<16x8xbf16>, vector<8x32xbf16>, vector<16x32xf32> -> vector<16x32xf32>
    %204 = vector.extract_strided_slice %169 {offsets = [0, 8], sizes = [16, 8], strides = [1, 1]} : vector<16x32xf32> to vector<16x8xf32>
    %205 = vector.shape_cast %204 : vector<16x8xf32> to vector<2x8x8xf32>
    %206 = arith.truncf %205 : vector<2x8x8xf32> to vector<2x8x8xbf16>
    %207 = vector.extract_strided_slice %177 {offsets = [0, 8], sizes = [16, 8], strides = [1, 1]} : vector<16x64xf32> to vector<16x8xf32>
    %208 = vector.shape_cast %207 : vector<16x8xf32> to vector<2x8x8xf32>
    %209 = arith.truncf %208 : vector<2x8x8xf32> to vector<2x8x8xbf16>
    %210 = vector.extract_strided_slice %177 {offsets = [0, 40], sizes = [16, 8], strides = [1, 1]} : vector<16x64xf32> to vector<16x8xf32>
    %211 = vector.shape_cast %210 : vector<16x8xf32> to vector<2x8x8xf32>
    %212 = arith.truncf %211 : vector<2x8x8xf32> to vector<2x8x8xbf16>
    "tpu.trace_start"() <{level = 10 : i32, message = "btd,bsd->bts"}> : () -> ()
    %cst_56 = arith.constant dense<0.000000e+00> : vector<2x8x8xf32>
    %213 = tpu.matmul %206, %209, %cst_56 {dimension_numbers = #tpu.dot_dimension_numbers<[2], [2], [1], [1], [0, 0, 0, 1, 1, 1], [0], [0]>} : vector<2x8x8xbf16>, vector<2x8x8xbf16>, vector<2x8x8xf32> -> vector<2x8x8xf32>
    "tpu.trace_stop"() : () -> ()
    %cst_57 = arith.constant dense<0xFF800000> : vector<2x8xf32>
    %214 = vector.multi_reduction <maximumf>, %213, %cst_57 [2] : vector<2x8x8xf32> to vector<2x8xf32>
    %215 = vector.shape_cast %214 : vector<2x8xf32> to vector<2x8x1xf32>
    %216 = vector.broadcast %215 : vector<2x8x1xf32> to vector<2x8x8xf32>
    %217 = arith.subf %213, %216 : vector<2x8x8xf32>
    %218 = math.exp %217 : vector<2x8x8xf32>
    %cst_58 = arith.constant dense<0.000000e+00> : vector<2x8xf32>
    %219 = vector.multi_reduction <add>, %218, %cst_58 [2] : vector<2x8x8xf32> to vector<2x8xf32>
    %220 = vector.shape_cast %219 : vector<2x8xf32> to vector<2x8x1xf32>
    %221 = tpu.reciprocal %220 {approx = true} : vector<2x8x1xf32> -> vector<2x8x1xf32>
    %222 = vector.broadcast %221 : vector<2x8x1xf32> to vector<2x8x8xf32>
    %223 = arith.mulf %218, %222 : vector<2x8x8xf32>
    %224 = arith.truncf %223 : vector<2x8x8xf32> to vector<2x8x8xbf16>
    "tpu.trace_start"() <{level = 10 : i32, message = "bts,bsd->btd"}> : () -> ()
    %cst_59 = arith.constant dense<0.000000e+00> : vector<2x8x8xf32>
    %225 = tpu.matmul %224, %212, %cst_59 {dimension_numbers = #tpu.dot_dimension_numbers<[2], [1], [1], [2], [0, 0, 0, 1, 1, 2], [0], [0]>} : vector<2x8x8xbf16>, vector<2x8x8xbf16>, vector<2x8x8xf32> -> vector<2x8x8xf32>
    "tpu.trace_stop"() : () -> ()
    %c8_60 = arith.constant 8 : index
    %c512_61 = arith.constant 512 : index
    %226 = vector.load %arg2[%c8_60, %c512_61] : memref<32x768xbf16, #tpu.memory_space<vmem>>, vector<8x32xbf16>
    %227 = vector.shape_cast %225 : vector<2x8x8xf32> to vector<16x8xf32>
    %228 = arith.truncf %227 : vector<16x8xf32> to vector<16x8xbf16>
    %cst_62 = arith.constant dense<0.000000e+00> : vector<16x32xf32>
    %229 = tpu.matmul %228, %226, %cst_62 {dimension_numbers = #tpu.dot_dimension_numbers<[1], [0], [0], [1], [0, 0, 1, 1], [], []>} : vector<16x8xbf16>, vector<8x32xbf16>, vector<16x32xf32> -> vector<16x32xf32>
    %230 = arith.addf %203, %229 : vector<16x32xf32>
    %231 = vector.extract_strided_slice %169 {offsets = [0, 16], sizes = [16, 8], strides = [1, 1]} : vector<16x32xf32> to vector<16x8xf32>
    %232 = vector.shape_cast %231 : vector<16x8xf32> to vector<2x8x8xf32>
    %233 = arith.truncf %232 : vector<2x8x8xf32> to vector<2x8x8xbf16>
    %234 = vector.extract_strided_slice %177 {offsets = [0, 16], sizes = [16, 8], strides = [1, 1]} : vector<16x64xf32> to vector<16x8xf32>
    %235 = vector.shape_cast %234 : vector<16x8xf32> to vector<2x8x8xf32>
    %236 = arith.truncf %235 : vector<2x8x8xf32> to vector<2x8x8xbf16>
    %237 = vector.extract_strided_slice %177 {offsets = [0, 48], sizes = [16, 8], strides = [1, 1]} : vector<16x64xf32> to vector<16x8xf32>
    %238 = vector.shape_cast %237 : vector<16x8xf32> to vector<2x8x8xf32>
    %239 = arith.truncf %238 : vector<2x8x8xf32> to vector<2x8x8xbf16>
    "tpu.trace_start"() <{level = 10 : i32, message = "btd,bsd->bts"}> : () -> ()
    %cst_63 = arith.constant dense<0.000000e+00> : vector<2x8x8xf32>
    %240 = tpu.matmul %233, %236, %cst_63 {dimension_numbers = #tpu.dot_dimension_numbers<[2], [2], [1], [1], [0, 0, 0, 1, 1, 1], [0], [0]>} : vector<2x8x8xbf16>, vector<2x8x8xbf16>, vector<2x8x8xf32> -> vector<2x8x8xf32>
    "tpu.trace_stop"() : () -> ()
    %cst_64 = arith.constant dense<0xFF800000> : vector<2x8xf32>
    %241 = vector.multi_reduction <maximumf>, %240, %cst_64 [2] : vector<2x8x8xf32> to vector<2x8xf32>
    %242 = vector.shape_cast %241 : vector<2x8xf32> to vector<2x8x1xf32>
    %243 = vector.broadcast %242 : vector<2x8x1xf32> to vector<2x8x8xf32>
    %244 = arith.subf %240, %243 : vector<2x8x8xf32>
    %245 = math.exp %244 : vector<2x8x8xf32>
    %cst_65 = arith.constant dense<0.000000e+00> : vector<2x8xf32>
    %246 = vector.multi_reduction <add>, %245, %cst_65 [2] : vector<2x8x8xf32> to vector<2x8xf32>
    %247 = vector.shape_cast %246 : vector<2x8xf32> to vector<2x8x1xf32>
    %248 = tpu.reciprocal %247 {approx = true} : vector<2x8x1xf32> -> vector<2x8x1xf32>
    %249 = vector.broadcast %248 : vector<2x8x1xf32> to vector<2x8x8xf32>
    %250 = arith.mulf %245, %249 : vector<2x8x8xf32>
    %251 = arith.truncf %250 : vector<2x8x8xf32> to vector<2x8x8xbf16>
    "tpu.trace_start"() <{level = 10 : i32, message = "bts,bsd->btd"}> : () -> ()
    %cst_66 = arith.constant dense<0.000000e+00> : vector<2x8x8xf32>
    %252 = tpu.matmul %251, %239, %cst_66 {dimension_numbers = #tpu.dot_dimension_numbers<[2], [1], [1], [2], [0, 0, 0, 1, 1, 2], [0], [0]>} : vector<2x8x8xbf16>, vector<2x8x8xbf16>, vector<2x8x8xf32> -> vector<2x8x8xf32>
    "tpu.trace_stop"() : () -> ()
    %c16_67 = arith.constant 16 : index
    %c512_68 = arith.constant 512 : index
    %253 = vector.load %arg2[%c16_67, %c512_68] : memref<32x768xbf16, #tpu.memory_space<vmem>>, vector<8x32xbf16>
    %254 = vector.shape_cast %252 : vector<2x8x8xf32> to vector<16x8xf32>
    %255 = arith.truncf %254 : vector<16x8xf32> to vector<16x8xbf16>
    %cst_69 = arith.constant dense<0.000000e+00> : vector<16x32xf32>
    %256 = tpu.matmul %255, %253, %cst_69 {dimension_numbers = #tpu.dot_dimension_numbers<[1], [0], [0], [1], [0, 0, 1, 1], [], []>} : vector<16x8xbf16>, vector<8x32xbf16>, vector<16x32xf32> -> vector<16x32xf32>
    %257 = arith.addf %230, %256 : vector<16x32xf32>
    %258 = vector.extract_strided_slice %169 {offsets = [0, 24], sizes = [16, 8], strides = [1, 1]} : vector<16x32xf32> to vector<16x8xf32>
    %259 = vector.shape_cast %258 : vector<16x8xf32> to vector<2x8x8xf32>
    %260 = arith.truncf %259 : vector<2x8x8xf32> to vector<2x8x8xbf16>
    %261 = vector.extract_strided_slice %177 {offsets = [0, 24], sizes = [16, 8], strides = [1, 1]} : vector<16x64xf32> to vector<16x8xf32>
    %262 = vector.shape_cast %261 : vector<16x8xf32> to vector<2x8x8xf32>
    %263 = arith.truncf %262 : vector<2x8x8xf32> to vector<2x8x8xbf16>
    %264 = vector.extract_strided_slice %177 {offsets = [0, 56], sizes = [16, 8], strides = [1, 1]} : vector<16x64xf32> to vector<16x8xf32>
    %265 = vector.shape_cast %264 : vector<16x8xf32> to vector<2x8x8xf32>
    %266 = arith.truncf %265 : vector<2x8x8xf32> to vector<2x8x8xbf16>
    "tpu.trace_start"() <{level = 10 : i32, message = "btd,bsd->bts"}> : () -> ()
    %cst_70 = arith.constant dense<0.000000e+00> : vector<2x8x8xf32>
    %267 = tpu.matmul %260, %263, %cst_70 {dimension_numbers = #tpu.dot_dimension_numbers<[2], [2], [1], [1], [0, 0, 0, 1, 1, 1], [0], [0]>} : vector<2x8x8xbf16>, vector<2x8x8xbf16>, vector<2x8x8xf32> -> vector<2x8x8xf32>
    "tpu.trace_stop"() : () -> ()
    %cst_71 = arith.constant dense<0xFF800000> : vector<2x8xf32>
    %268 = vector.multi_reduction <maximumf>, %267, %cst_71 [2] : vector<2x8x8xf32> to vector<2x8xf32>
    %269 = vector.shape_cast %268 : vector<2x8xf32> to vector<2x8x1xf32>
    %270 = vector.broadcast %269 : vector<2x8x1xf32> to vector<2x8x8xf32>
    %271 = arith.subf %267, %270 : vector<2x8x8xf32>
    %272 = math.exp %271 : vector<2x8x8xf32>
    %cst_72 = arith.constant dense<0.000000e+00> : vector<2x8xf32>
    %273 = vector.multi_reduction <add>, %272, %cst_72 [2] : vector<2x8x8xf32> to vector<2x8xf32>
    %274 = vector.shape_cast %273 : vector<2x8xf32> to vector<2x8x1xf32>
    %275 = tpu.reciprocal %274 {approx = true} : vector<2x8x1xf32> -> vector<2x8x1xf32>
    %276 = vector.broadcast %275 : vector<2x8x1xf32> to vector<2x8x8xf32>
    %277 = arith.mulf %272, %276 : vector<2x8x8xf32>
    %278 = arith.truncf %277 : vector<2x8x8xf32> to vector<2x8x8xbf16>
    "tpu.trace_start"() <{level = 10 : i32, message = "bts,bsd->btd"}> : () -> ()
    %cst_73 = arith.constant dense<0.000000e+00> : vector<2x8x8xf32>
    %279 = tpu.matmul %278, %266, %cst_73 {dimension_numbers = #tpu.dot_dimension_numbers<[2], [1], [1], [2], [0, 0, 0, 1, 1, 2], [0], [0]>} : vector<2x8x8xbf16>, vector<2x8x8xbf16>, vector<2x8x8xf32> -> vector<2x8x8xf32>
    "tpu.trace_stop"() : () -> ()
    %c24_74 = arith.constant 24 : index
    %c512_75 = arith.constant 512 : index
    %280 = vector.load %arg2[%c24_74, %c512_75] : memref<32x768xbf16, #tpu.memory_space<vmem>>, vector<8x32xbf16>
    %281 = vector.shape_cast %279 : vector<2x8x8xf32> to vector<16x8xf32>
    %282 = arith.truncf %281 : vector<16x8xf32> to vector<16x8xbf16>
    %cst_76 = arith.constant dense<0.000000e+00> : vector<16x32xf32>
    %283 = tpu.matmul %282, %280, %cst_76 {dimension_numbers = #tpu.dot_dimension_numbers<[1], [0], [0], [1], [0, 0, 1, 1], [], []>} : vector<16x8xbf16>, vector<8x32xbf16>, vector<16x32xf32> -> vector<16x32xf32>
    %284 = arith.addf %257, %283 : vector<16x32xf32>
    %c4 = arith.constant 4 : index
    %c0_77 = arith.constant 0 : index
    %285 = vector.load %arg4[%c4, %c0_77] : memref<16x128xf32, #tpu.memory_space<vmem>>, vector<1x32xf32>
    %286 = vector.shape_cast %285 : vector<1x32xf32> to vector<32xf32>
    %287 = vector.shape_cast %286 : vector<32xf32> to vector<1x32xf32>
    %288 = vector.broadcast %287 : vector<1x32xf32> to vector<16x32xf32>
    %289 = arith.addf %284, %288 : vector<16x32xf32>
    %290 = arith.addf %289, %161 : vector<16x32xf32>
    %c9 = arith.constant 9 : index
    %c0_78 = arith.constant 0 : index
    %291 = vector.load %arg4[%c9, %c0_78] : memref<16x128xf32, #tpu.memory_space<vmem>>, vector<1x32xf32>
    %292 = vector.shape_cast %291 : vector<1x32xf32> to vector<32xf32>
    %c10 = arith.constant 10 : index
    %c0_79 = arith.constant 0 : index
    %293 = vector.load %arg4[%c10, %c0_79] : memref<16x128xf32, #tpu.memory_space<vmem>>, vector<1x32xf32>
    %294 = vector.shape_cast %293 : vector<1x32xf32> to vector<32xf32>
    %cst_80 = arith.constant dense<0.000000e+00> : vector<16xf32>
    %295 = vector.multi_reduction <add>, %290, %cst_80 [1] : vector<16x32xf32> to vector<16xf32>
    %296 = vector.shape_cast %295 : vector<16xf32> to vector<16x1xf32>
    %cst_81 = arith.constant 3.200000e+01 : f32
    %297 = vector.broadcast %cst_81 : f32 to vector<16x1xf32>
    %298 = arith.divf %296, %297 : vector<16x1xf32>
    %299 = arith.mulf %290, %290 : vector<16x32xf32>
    %cst_82 = arith.constant dense<0.000000e+00> : vector<16xf32>
    %300 = vector.multi_reduction <add>, %299, %cst_82 [1] : vector<16x32xf32> to vector<16xf32>
    %301 = vector.shape_cast %300 : vector<16xf32> to vector<16x1xf32>
    %cst_83 = arith.constant 3.200000e+01 : f32
    %302 = vector.broadcast %cst_83 : f32 to vector<16x1xf32>
    %303 = arith.divf %301, %302 : vector<16x1xf32>
    %304 = arith.mulf %298, %298 : vector<16x1xf32>
    %305 = arith.subf %303, %304 : vector<16x1xf32>
    %306 = vector.broadcast %298 : vector<16x1xf32> to vector<16x32xf32>
    %307 = arith.subf %290, %306 : vector<16x32xf32>
    %cst_84 = arith.constant 9.99999974E-6 : f32
    %308 = vector.broadcast %cst_84 : f32 to vector<16x1xf32>
    %309 = arith.addf %305, %308 : vector<16x1xf32>
    %310 = math.rsqrt %309 : vector<16x1xf32>
    %311 = vector.broadcast %310 : vector<16x1xf32> to vector<16x32xf32>
    %312 = arith.mulf %307, %311 : vector<16x32xf32>
    %313 = vector.shape_cast %292 : vector<32xf32> to vector<1x32xf32>
    %314 = vector.broadcast %313 : vector<1x32xf32> to vector<16x32xf32>
    %315 = arith.mulf %312, %314 : vector<16x32xf32>
    %316 = vector.shape_cast %294 : vector<32xf32> to vector<1x32xf32>
    %317 = vector.broadcast %316 : vector<1x32xf32> to vector<16x32xf32>
    %318 = arith.addf %315, %317 : vector<16x32xf32>
    %319 = arith.truncf %318 : vector<16x32xf32> to vector<16x32xbf16>
    %c0_85 = arith.constant 0 : index
    %c640 = arith.constant 640 : index
    %320 = vector.load %arg2[%c0_85, %c640] : memref<32x768xbf16, #tpu.memory_space<vmem>>, vector<32x128xbf16>
    %cst_86 = arith.constant dense<0.000000e+00> : vector<16x128xf32>
    %321 = tpu.matmul %319, %320, %cst_86 {dimension_numbers = #tpu.dot_dimension_numbers<[1], [0], [0], [1], [0, 0, 1, 1], [], []>} : vector<16x32xbf16>, vector<32x128xbf16>, vector<16x128xf32> -> vector<16x128xf32>
    %c5 = arith.constant 5 : index
    %c0_87 = arith.constant 0 : index
    %322 = vector.load %arg4[%c5, %c0_87] : memref<16x128xf32, #tpu.memory_space<vmem>>, vector<1x128xf32>
    %323 = vector.shape_cast %322 : vector<1x128xf32> to vector<128xf32>
    %324 = vector.shape_cast %323 : vector<128xf32> to vector<1x128xf32>
    %325 = vector.broadcast %324 : vector<1x128xf32> to vector<16x128xf32>
    %326 = arith.addf %321, %325 : vector<16x128xf32>
    %cst_88 = arith.constant 5.000000e-01 : f32
    %327 = vector.broadcast %cst_88 : f32 to vector<16x128xf32>
    %328 = arith.mulf %327, %326 : vector<16x128xf32>
    %cst_89 = arith.constant 0.707106769 : f32
    %329 = vector.broadcast %cst_89 : f32 to vector<16x128xf32>
    %330 = arith.mulf %326, %329 : vector<16x128xf32>
    %331 = math.erf %330 : vector<16x128xf32>
    %cst_90 = arith.constant 1.000000e+00 : f32
    %332 = vector.broadcast %cst_90 : f32 to vector<16x128xf32>
    %333 = arith.addf %332, %331 : vector<16x128xf32>
    %334 = arith.mulf %328, %333 : vector<16x128xf32>
    %335 = arith.truncf %334 : vector<16x128xf32> to vector<16x128xbf16>
    %c0_91 = arith.constant 0 : index
    %c0_92 = arith.constant 0 : index
    %336 = vector.load %arg3[%c0_91, %c0_92] : memref<128x32xbf16, #tpu.memory_space<vmem>>, vector<128x32xbf16>
    %cst_93 = arith.constant dense<0.000000e+00> : vector<16x32xf32>
    %337 = tpu.matmul %335, %336, %cst_93 {dimension_numbers = #tpu.dot_dimension_numbers<[1], [0], [0], [1], [0, 0, 1, 1], [], []>} : vector<16x128xbf16>, vector<128x32xbf16>, vector<16x32xf32> -> vector<16x32xf32>
    %c6 = arith.constant 6 : index
    %c0_94 = arith.constant 0 : index
    %338 = vector.load %arg4[%c6, %c0_94] : memref<16x128xf32, #tpu.memory_space<vmem>>, vector<1x32xf32>
    %339 = vector.shape_cast %338 : vector<1x32xf32> to vector<32xf32>
    %340 = vector.shape_cast %339 : vector<32xf32> to vector<1x32xf32>
    %341 = vector.broadcast %340 : vector<1x32xf32> to vector<16x32xf32>
    %342 = arith.addf %337, %341 : vector<16x32xf32>
    %343 = arith.addf %342, %318 : vector<16x32xf32>
    %c11 = arith.constant 11 : index
    %c0_95 = arith.constant 0 : index
    %344 = vector.load %arg4[%c11, %c0_95] : memref<16x128xf32, #tpu.memory_space<vmem>>, vector<1x32xf32>
    %345 = vector.shape_cast %344 : vector<1x32xf32> to vector<32xf32>
    %c12 = arith.constant 12 : index
    %c0_96 = arith.constant 0 : index
    %346 = vector.load %arg4[%c12, %c0_96] : memref<16x128xf32, #tpu.memory_space<vmem>>, vector<1x32xf32>
    %347 = vector.shape_cast %346 : vector<1x32xf32> to vector<32xf32>
    %cst_97 = arith.constant dense<0.000000e+00> : vector<16xf32>
    %348 = vector.multi_reduction <add>, %343, %cst_97 [1] : vector<16x32xf32> to vector<16xf32>
    %349 = vector.shape_cast %348 : vector<16xf32> to vector<16x1xf32>
    %cst_98 = arith.constant 3.200000e+01 : f32
    %350 = vector.broadcast %cst_98 : f32 to vector<16x1xf32>
    %351 = arith.divf %349, %350 : vector<16x1xf32>
    %352 = arith.mulf %343, %343 : vector<16x32xf32>
    %cst_99 = arith.constant dense<0.000000e+00> : vector<16xf32>
    %353 = vector.multi_reduction <add>, %352, %cst_99 [1] : vector<16x32xf32> to vector<16xf32>
    %354 = vector.shape_cast %353 : vector<16xf32> to vector<16x1xf32>
    %cst_100 = arith.constant 3.200000e+01 : f32
    %355 = vector.broadcast %cst_100 : f32 to vector<16x1xf32>
    %356 = arith.divf %354, %355 : vector<16x1xf32>
    %357 = arith.mulf %351, %351 : vector<16x1xf32>
    %358 = arith.subf %356, %357 : vector<16x1xf32>
    %359 = vector.broadcast %351 : vector<16x1xf32> to vector<16x32xf32>
    %360 = arith.subf %343, %359 : vector<16x32xf32>
    %cst_101 = arith.constant 9.99999974E-6 : f32
    %361 = vector.broadcast %cst_101 : f32 to vector<16x1xf32>
    %362 = arith.addf %358, %361 : vector<16x1xf32>
    %363 = math.rsqrt %362 : vector<16x1xf32>
    %364 = vector.broadcast %363 : vector<16x1xf32> to vector<16x32xf32>
    %365 = arith.mulf %360, %364 : vector<16x32xf32>
    %366 = vector.shape_cast %345 : vector<32xf32> to vector<1x32xf32>
    %367 = vector.broadcast %366 : vector<1x32xf32> to vector<16x32xf32>
    %368 = arith.mulf %365, %367 : vector<16x32xf32>
    %369 = vector.shape_cast %347 : vector<32xf32> to vector<1x32xf32>
    %370 = vector.broadcast %369 : vector<1x32xf32> to vector<16x32xf32>
    %371 = arith.addf %368, %370 : vector<16x32xf32>
    %c0_102 = arith.constant 0 : index
    %c0_103 = arith.constant 0 : index
    %372 = vector.load %arg5[%c0_102, %c0_103] : memref<16x32xf32, #tpu.memory_space<vmem>>, vector<16x32xf32>
    tpu.vector_store %arg5[%c0_102, %c0_103], %371 {strides = array<i32>} : memref<16x32xf32, #tpu.memory_space<vmem>>, vector<16x32xf32>,
    return
  }
}

</mosaic_0001>

<bundles_post_ra>
// kernel: decoder_forward.1
= control target key start
LH: loop header
LB: loop body
LE: loop exit
PB: predicated region body
PF: predicated region fallthrough
CT: control target
= control target key end

     0   :  { %10 = vsyncpa [#allocation3], 0  ;;  %s3988_s0 = inlined_call_operand.vmem [shape: f32[16,32], index: 0, kind: input, shape index: {}]   ;;  %s3989_s1 = inlined_call_operand.vmem [shape: f32[16,32], index: 1, kind: input, shape index: {}]   ;;  %s3990_s2 = inlined_call_operand.hbm [shape: bf16[32,768], index: 2, kind: input, shape index: {}]   ;;  %s3991_s3 = inlined_call_operand.vmem [shape: bf16[128,32], index: 3, kind: input, shape index: {}]   ;;  %s3992_s4 = inlined_call_operand.vmem [shape: f32[16,128], index: 4, kind: input, shape index: {}]   ;;  %s3993_s5 = inlined_call_operand.hbm [shape: f32[16,32], index: 5, kind: output, shape index: {}]  }
   0x1   :  { %11 = vsyncpa [#allocation4], 0  ;;  %s3402_s18 = smov [#allocation2]   ;;  %s3354_s22 = scalar_lea.hbm %s3990_s2, 1536 }
   0x2   :  { %s21_s19 = sshll.u32 %s3402_s18, 4  ;;  %p3355_p0 = scmp.ne.s32.totalorder %s3990_s2, %s3354_s22  ;;  %s22_s19 = int_to_ptr.vmem [resolvable:$true] %s21_s19 }
   0x3   :  { %p3358_p1 = scmp.lt.u32.totalorder %s3354_s22, %s3990_s2 }
   0x5   :  { %p3360_p2 = pnand %p3358_p1, %p3355_p0 }
   0x7   :  { %3363 = shalt.err (!%p3360_p2)
}
   0x8   :  { %s3364_s27 = scalar_lea.vmem %s22_s19, 1536  ;;  %p3369_p4 = scmp.lt.s32.totalorder %s22_s19, %s22_s19 }
   0x9   :  { %p3365_p3 = scmp.ne.s32.totalorder %s22_s19, %s3364_s27  ;;  %p3370_p5 = scmp.lt.s32.totalorder %s3364_s27, %s3364_s27 }
   0xb   :  { %p3371_p6 = por %p3370_p5, %p3369_p4 }
   0xd   :  { %p3372_p7 = pnand %p3371_p6, %p3365_p3 }
   0xf   :  { %3375 = shalt.err (!%p3372_p7)
}
  0x10   :  { %s3403_s28 = smov 384   ;;  %s3404_s29 = smov 24  }
  0x11   :  { %27 = dma.hbm_to_vmem [thread:$0]  %s3990_s2, 1536, %s22_s19, [#allocation3], %s3403_s28, %s3403_s28, %s3404_s29  }
  0x12   :  { %3398 = dma.done.wait [#allocation3], 1536  }
  0x13   :  { %3399 = vsyncadd [#allocation3], 4294965760  ;;  %v3405_v0 = vmov 0.0   ;;  %vm3406_vm0 = vmmov 0   ;;  %v3258_v1 = vld [vmem:[#allocation2] ss:$24 sps:$4 sm:$0xff]   ;;  %v40_v19 = vlaneseq }
  0x14   :  { %2947 = vmatprep.subr.bf16.mxu1 %v3405_v0  ;;  %2951 = vmatprep.mubr.msk.bf16.mxu1 %vm3406_vm0, %v3405_v0  ;;  %v3259_v2 = vld [vmem:[#allocation2 + $0x30] ss:$24 sps:$4 sm:$0xff]   ;;  %v3472_v3 = vld [vmem:[%s3988_s0] sm:$0xff]  ;;  %vm67_vm1 = vcmask 261120   ;;  %vm117_vm2 = vcmask 64512   ;;  %s3408_s12 = smov 64  }
  0x15   :  { %2973 = vmatprep.subr.bf16.mxu0 %v3405_v0  ;;  %2975 = vmatprep.mubr.msk.bf16.mxu0 %vm3406_vm0, %v3405_v0  ;;  %v3477_v4 = vld [vmem:[%s3988_s0 + $0x8] sm:$0xff]  ;;  %v2773_v6 = vld [vmem:[%s3992_s4] ss:$0 sm:$0xff]  ;;  %s3407_s0 = smov 96   ;;  %v41_v20 = vshrl.u32 %v40_v19, 7  ;;  %v43_v21 = vand.u32 127, %v40_v19 }
  0x16   :  { %2948 = vmatpush3.bf16.msra.mxu1 %v3258_v1  ;;  %v45_v5 = vpack.c.bf16 %v3477_v4, %v3472_v3  ;;  %s3409_s13 = smov 88   ;;  %vm244_vm4 = vcmask 1043456   ;;  %s3410_s14 = smov 120  }
  0x17   :  { %2949 = vmatprep.subr.bf16.mxu1 %v3405_v0  ;;  %vm3509_vm3 = vcmp.le.s32.totalorder %v43_v21, %v41_v20  ;;  %s3411_s15 = smov 56   ;;  %s3412_s16 = smov 112  }
  0x18   :  { %s3413_s17 = smov 80   ;;  %s3414_s18 = smov 48  }
  0x19   :  { %s3415_s19 = smov 72   ;;  %s3416_s20 = smov 104  }
  0x1a   :  { %2950 = vmatpush3.bf16.msra.mxu1 %v3259_v2  ;;  %s3417_s21 = smov 40   ;;  %s3418_s10 = smov [#allocation5]  }
  0x1b   :  { %2955 = vmatprep.subr.bf16.mxu1 %v3405_v0  ;;  %s2761_s11 = sshll.u32 %s3418_s10, 4  ;;  %s2762_s11 = int_to_ptr.vmem [resolvable:$true] %s2761_s11 }
  0x1c   :  { %p3381_p9 = scmp.lt.s32.totalorder %s2762_s11, %s2762_s11 }
  0x1d   :  { %2952 = vmatmul.mubr.msk.bf16.vlgmr.msra.gmra.mrb[0].mxu1 %vm67_vm1, %v45_v5 }
  0x1e   :  { %2957 = vmatprep.mubr.msk.bf16.mxu1 %vm3406_vm0, %v3405_v0 }
  0xf0   :  { %v105_v7 = vpop.f32.mrb[0].mxu1 }
  0xf1   :  { %v106_v8 = vadd.f32 %v2773_v6, %v105_v7  ;;  %v2953_v9 = vpop.f32.mrb[1].mxu1 }
  0xf2   :  { %v108_v10 = vpop.f32.mrb[2].mxu1 }
  0xf3   :  { %v3489_v11 = vpack.c.bf16 %v106_v8, %v106_v8  ;;  %v109_v12 = vadd.f32 %v2773_v6, %v108_v10  ;;  %v2954_v13 = vpop.f32.mrb[3].mxu1 }
  0xf5   :  { %115 = vrot.lane.b32.xlu0 %v3489_v11, %s3407_s0  ;;  %v3493_v14 = vpack.c.bf16 %v109_v12, %v109_v12 }
  0xf9   :  { %165 = vrot.lane.b32.xlu0 %v3493_v14, %s3407_s0 }
 0x167   :  { %v116_v15 = vpop.permute.xlu0 %115 }
 0x168   :  { %v122_v16 = vsel %vm117_vm2, %v116_v15, 0 }
 0x169   :  { %2956 = vmatpush3.bf16.xpose.msra.mxu1 %v122_v16 }
 0x16a   :  { %2961 = vmatprep.subr.bf16.mxu1 %v3405_v0 }
 0x16b   :  { %v166_v17 = vpop.permute.xlu0 %165 }
 0x16c   :  { %v171_v18 = vsel %vm117_vm2, %v166_v17, 0 }
 0x170   :  { %2958 = vmatmul.mubr.msk.bf16.vlgmr.msra.gmra.mrb[4].mxu1 %vm117_vm2, %v3489_v11 }
 0x171   :  { %2962 = vmatpush3.bf16.xpose.msra.mxu1 %v171_v18  ;;  %2963 = vmatprep.mubr.msk.bf16.mxu1 %vm3406_vm0, %v3405_v0 }
 0x172   :  { %2967 = vmatprep.subr.bf16.mxu1 %v3405_v0 }
 0x178   :  { %2964 = vmatmul.mubr.msk.bf16.vlgmr.msra.gmra.mrb[8].mxu1 %vm117_vm2, %v3493_v14 }
 0x179   :  { %2969 = vmatprep.mubr.msk.bf16.mxu1 %vm3406_vm0, %v3405_v0 }
 0x243   :  { %v158_v23 = vpop.f32.mrb[4].mxu1 }
 0x244   :  { %v213_v24 = vsel %vm3509_vm3, %v158_v23, -inf  ;;  %v2959_v25 = vpop.f32.mrb[5].mxu1 }
 0x245   :  { %v161_v26 = vpop.f32.mrb[6].mxu1  ;;  %v215_v27 = vsel %vm117_vm2, %v213_v24, -inf }
 0x246   :  { %216 = vmax.xlane.f32.xlu1 %v215_v27  ;;  %v2960_v28 = vpop.f32.mrb[7].mxu1 }
 0x24b   :  { %v207_v29 = vpop.f32.mrb[8].mxu1 }
 0x24c   :  { %v214_v30 = vsel %vm3509_vm3, %v207_v29, -inf  ;;  %v2965_v31 = vpop.f32.mrb[9].mxu1 }
 0x24d   :  { %v210_v32 = vpop.f32.mrb[10].mxu1  ;;  %v218_v33 = vsel %vm117_vm2, %v214_v30, -inf }
 0x24e   :  { %219 = vmax.xlane.f32.xlu1 %v218_v33  ;;  %v2966_v34 = vpop.f32.mrb[11].mxu1 }
 0x25f   :  { %239 = vrot.lane.b32.xlu1 %v3489_v11, %s3408_s12 }
 0x263   :  { %288 = vrot.lane.b32.xlu1 %v3493_v14, %s3408_s12 }
 0x267   :  { %340 = vrot.lane.b32.xlu1 %v3489_v11, %s3409_s13 }
 0x2d3   :  { %v217_v35 = vpop.xlane.xlu1 %216 }
 0x2d4   :  { %v221_v36 = vsub.f32 %v213_v24, %v217_v35 }
 0x2d6   :  { %v223_v37 = vmul.f32 1.442695, %v221_v36 }
 0x2d8   :  { %3274 = vpow2.f32 %v223_v37 }
 0x2db   :  { %v220_v38 = vpop.xlane.xlu1 %219 }
 0x2dc   :  { %v222_v39 = vsub.f32 %v214_v30, %v220_v38 }
 0x2de   :  { %v225_v40 = vmul.f32 1.442695, %v222_v39 }
 0x2df   :  { %v240_v41 = vpop.permute.xlu1 %239 }
 0x2e0   :  { %3276 = vpow2.f32 %v225_v40  ;;  %v246_v42 = vsel %vm244_vm4, %v240_v41, 0 }
 0x2e1   :  { %2968 = vmatpush3.bf16.msra.mxu1 %v246_v42 }
 0x2e2   :  { %v3275_v43 = vpop.eup %3274  ;;  %2979 = vmatprep.subr.bf16.mxu1 %v3405_v0 }
 0x2e3   :  { %v289_v44 = vpop.permute.xlu1 %288  ;;  %v227_v45 = vsel %vm117_vm2, %v3275_v43, 0.0 }
 0x2e4   :  { %228 = vadd.xlane.f32.xlu0 %v227_v45  ;;  %v294_v46 = vsel %vm244_vm4, %v289_v44, 0 }
 0x2e5   :  { %2974 = vmatpush3.bf16.msra.mxu0 %v294_v46  ;;  %v336_v46 = vld [vmem:[#allocation2 + $0x4] sm:$0xf] }
 0x2e6   :  { %2985 = vmatprep.subr.bf16.mxu0 %v3405_v0 }
 0x2e7   :  { %v341_v50 = vpop.permute.xlu1 %340 }
 0x2e8   :  { %v346_v55 = vsel %vm117_vm2, %v341_v50, 0 }
 0x2ea   :  { %v3277_v47 = vpop.eup %3276 }
 0x2eb   :  { %v230_v48 = vsel %vm117_vm2, %v3277_v47, 0.0 }
 0x2ec   :  { %231 = vadd.xlane.f32.xlu1 %v230_v48 }
 0x2fa   :  { %338 = vrot.lane.b32.xlu0 %v3489_v11, %s3410_s14 }
 0x2fd   :  { %390 = vrot.lane.b32.xlu1 %v3493_v14, %s3409_s13 }
 0x301   :  { %388 = vrot.lane.b32.xlu1 %v3493_v14, %s3410_s14 }
 0x371   :  { %v229_v49 = vpop.xlane.xlu0 %228 }
 0x372   :  { %3278 = vrcp.f32 %v229_v49  ;;  %v613_v49 = vsel %vm244_vm4, %v336_v46, 0 }
 0x375   :  { %v339_v60 = vpop.permute.xlu0 %338 }
 0x379   :  { %v232_v51 = vpop.xlane.xlu1 %231 }
 0x37a   :  { %3280 = vrcp.f32 %v232_v51 }
 0x37c   :  { %v3279_v52 = vpop.eup %3278 }
 0x37d   :  { %v235_v53 = vmul.f32 %v3279_v52, %v3275_v43  ;;  %v391_v58 = vpop.permute.xlu1 %390 }
 0x37e   :  { %v396_v61 = vsel %vm117_vm2, %v391_v58, 0 }
 0x37f   :  { %v237_v54 = vpack.c.bf16 %v235_v53, %v235_v53 }
 0x381   :  { %2970 = vmatmul.mubr.msk.bf16.vlgmr.msra.gmra.mrb[12].mxu1 %vm117_vm2, %v237_v54  ;;  %v389_v62 = vpop.permute.xlu1 %388  ;;  %v560_v54 = vld [vmem:[#allocation2 + $0x1c] sm:$0xf] }
 0x382   :  { %2980 = vmatpush3.bf16.xpose.msra.mxu1 %v346_v55  ;;  %2981 = vmatprep.mubr.msk.bf16.mxu1 %vm3406_vm0, %v3405_v0  ;;  %v566_v55 = vsel %vm244_vm4, %v560_v54, 0 }
 0x383   :  { %2991 = vmatprep.subr.bf16.mxu1 %v3405_v0 }
 0x384   :  { %v3281_v56 = vpop.eup %3280 }
 0x385   :  { %v236_v57 = vmul.f32 %v3281_v56, %v3277_v47 }
 0x387   :  { %v238_v59 = vpack.c.bf16 %v236_v57, %v236_v57 }
 0x389   :  { %2976 = vmatmul.mubr.msk.bf16.vlgmr.msra.gmra.mrb[0].mxu0 %vm117_vm2, %v238_v59  ;;  %2982 = vmatmul.mubr.msk.bf16.vlgmr.msra.gmra.mrb[16].mxu1 %vm117_vm2, %v339_v60 }
 0x38a   :  { %2986 = vmatpush3.bf16.xpose.msra.mxu0 %v396_v61  ;;  %2987 = vmatprep.mubr.msk.bf16.mxu0 %vm3406_vm0, %v3405_v0 }
 0x38b   :  { %2997 = vmatprep.subr.bf16.mxu0 %v3405_v0  ;;  %2993 = vmatprep.mubr.msk.bf16.mxu1 %vm3406_vm0, %v3405_v0 }
 0x391   :  { %2988 = vmatmul.mubr.msk.bf16.vlgmr.msra.gmra.mrb[4].mxu0 %vm117_vm2, %v389_v62 }
 0x392   :  { %2999 = vmatprep.mubr.msk.bf16.mxu0 %vm3406_vm0, %v3405_v0 }
 0x454   :  { %v3551_v63 = vpop.f32.mrb[12].mxu1 }
 0x455   :  { %v2971_v1 = vpop.f32.mrb[13].mxu1 }
 0x456   :  { %v285_v2 = vpop.f32.mrb[14].mxu1 }
 0x457   :  { %v2972_v5 = vpop.f32.mrb[15].mxu1 }
 0x45c   :  { %v3553_v6 = vpop.f32.mrb[0].mxu0  ;;  %v382_v7 = vpop.f32.mrb[16].mxu1 }
 0x45d   :  { %v337_v8 = vpack.c.bf16 %v3553_v6, %v3551_v63  ;;  %v438_v9 = vsel %vm3509_vm3, %v382_v7, -inf  ;;  %v2977_v10 = vpop.f32.mrb[1].mxu0  ;;  %v2983_v12 = vpop.f32.mrb[17].mxu1 }
 0x45e   :  { %v333_v13 = vpop.f32.mrb[2].mxu0  ;;  %v385_v15 = vpop.f32.mrb[18].mxu1  ;;  %v440_v16 = vsel %vm117_vm2, %v438_v9, -inf }
 0x45f   :  { %v2978_v17 = vpop.f32.mrb[3].mxu0  ;;  %441 = vmax.xlane.f32.xlu1 %v440_v16  ;;  %v2984_v18 = vpop.f32.mrb[19].mxu1 }
 0x464   :  { %v432_v19 = vpop.f32.mrb[4].mxu0 }
 0x465   :  { %v439_v20 = vsel %vm3509_vm3, %v432_v19, -inf  ;;  %v2989_v21 = vpop.f32.mrb[5].mxu0 }
 0x466   :  { %v435_v23 = vpop.f32.mrb[6].mxu0  ;;  %v443_v24 = vsel %vm117_vm2, %v439_v20, -inf }
 0x467   :  { %444 = vmax.xlane.f32.xlu0 %v443_v24  ;;  %v2990_v25 = vpop.f32.mrb[7].mxu0 }
 0x47d   :  { %512 = vrot.lane.b32.xlu0 %v3493_v14, %s3411_s15 }
 0x481   :  { %656 = vrot.lane.b32.xlu0 %v3489_v11, %s3412_s16 }
 0x4ec   :  { %v442_v26 = vpop.xlane.xlu1 %441 }
 0x4ed   :  { %v446_v27 = vsub.f32 %v438_v9, %v442_v26 }
 0x4ef   :  { %v448_v28 = vmul.f32 1.442695, %v446_v27 }
 0x4f1   :  { %3282 = vpow2.f32 %v448_v28 }
 0x4f4   :  { %v445_v29 = vpop.xlane.xlu0 %444 }
 0x4f5   :  { %v447_v30 = vsub.f32 %v439_v20, %v445_v29 }
 0x4f7   :  { %v450_v31 = vmul.f32 1.442695, %v447_v30 }
 0x4f8   :  { %v513_v32 = vpop.permute.xlu0 %512 }
 0x4f9   :  { %3284 = vpow2.f32 %v450_v31  ;;  %v518_v33 = vsel %vm244_vm4, %v513_v32, 0 }
 0x4fa   :  { %2998 = vmatpush3.bf16.msra.mxu0 %v518_v33 }
 0x4fb   :  { %v3283_v34 = vpop.eup %3282  ;;  %3009 = vmatprep.subr.bf16.mxu0 %v3405_v0 }
 0x4fc   :  { %v452_v35 = vsel %vm117_vm2, %v3283_v34, 0.0  ;;  %v657_v7 = vpop.permute.xlu0 %656 }
 0x4fd   :  { %453 = vadd.xlane.f32.xlu1 %v452_v35 }
 0x503   :  { %v3285_v36 = vpop.eup %3284 }
 0x504   :  { %v455_v37 = vsel %vm117_vm2, %v3285_v36, 0.0 }
 0x505   :  { %456 = vadd.xlane.f32.xlu1 %v455_v37 }
 0x516   :  { %464 = vrot.lane.b32.xlu1 %v3489_v11, %s3411_s15 }
 0x51a   :  { %658 = vrot.lane.b32.xlu1 %v3489_v11, %s3413_s17 }
 0x51e   :  { %708 = vrot.lane.b32.xlu1 %v3493_v14, %s3413_s17 }
 0x522   :  { %706 = vrot.lane.b32.xlu1 %v3493_v14, %s3412_s16 }
 0x58a   :  { %v454_v38 = vpop.xlane.xlu1 %453 }
 0x58b   :  { %3286 = vrcp.f32 %v454_v38 }
 0x592   :  { %v457_v39 = vpop.xlane.xlu1 %456 }
 0x593   :  { %3288 = vrcp.f32 %v457_v39 }
 0x595   :  { %v3287_v40 = vpop.eup %3286 }
 0x596   :  { %v460_v41 = vmul.f32 %v3287_v40, %v3283_v34  ;;  %v465_v42 = vpop.permute.xlu1 %464 }
 0x597   :  { %v470_v43 = vsel %vm244_vm4, %v465_v42, 0 }
 0x598   :  { %2992 = vmatpush3.bf16.msra.mxu1 %v470_v43  ;;  %v462_v44 = vpack.c.bf16 %v460_v41, %v460_v41 }
 0x599   :  { %3003 = vmatprep.subr.bf16.mxu1 %v3405_v0 }
 0x59a   :  { %v659_v50 = vpop.permute.xlu1 %658 }
 0x59b   :  { %2994 = vmatmul.mubr.msk.bf16.vlgmr.msra.gmra.mrb[20].mxu1 %vm117_vm2, %v462_v44  ;;  %v664_v1 = vsel %vm117_vm2, %v659_v50, 0 }
 0x59c   :  { %3005 = vmatprep.mubr.msk.bf16.mxu1 %vm3406_vm0, %v3405_v0  ;;  %3004 = vmatpush3.bf16.msra.mxu1 %v566_v55 }
 0x59d   :  { %v3289_v45 = vpop.eup %3288  ;;  %3015 = vmatprep.subr.bf16.mxu1 %v3405_v0 }
 0x59e   :  { %v461_v47 = vmul.f32 %v3289_v45, %v3285_v36  ;;  %v709_v51 = vpop.permute.xlu1 %708 }
 0x59f   :  { %v714_v52 = vsel %vm117_vm2, %v709_v51, 0 }
 0x5a0   :  { %v463_v48 = vpack.c.bf16 %v461_v47, %v461_v47 }
 0x5a2   :  { %3000 = vmatmul.mubr.msk.bf16.vlgmr.msra.gmra.mrb[8].mxu0 %vm117_vm2, %v463_v48  ;;  %v707_v53 = vpop.permute.xlu1 %706 }
 0x5a3   :  { %3010 = vmatpush3.bf16.msra.mxu0 %v613_v49  ;;  %3011 = vmatprep.mubr.msk.bf16.mxu0 %vm3406_vm0, %v3405_v0 }
 0x5a4   :  { %3021 = vmatprep.subr.bf16.mxu0 %v3405_v0 }
 0x5aa   :  { %3012 = vmatmul.mubr.msk.bf16.vlgmr.msra.gmra.mrb[12].mxu0 %vm117_vm2, %v337_v8 }
 0x5ab   :  { %3023 = vmatprep.mubr.msk.bf16.mxu0 %vm3406_vm0, %v3405_v0 }
 0x5ac   :  { %3022 = vmatpush3.bf16.xpose.msra.mxu0 %v714_v52 }
 0x5ad   :  { %3033 = vmatprep.subr.bf16.mxu0 %v3405_v0 }
 0x5b3   :  { %3024 = vmatmul.mubr.msk.bf16.vlgmr.msra.gmra.mrb[16].mxu0 %vm117_vm2, %v707_v53 }
 0x5b4   :  { %3035 = vmatprep.mubr.msk.bf16.mxu0 %vm3406_vm0, %v3405_v0 }
 0x66e   :  { %v506_v56 = vpop.f32.mrb[20].mxu1 }
 0x66f   :  { %v2995_v57 = vpop.f32.mrb[21].mxu1 }
 0x670   :  { %v509_v58 = vpop.f32.mrb[22].mxu1 }
 0x671   :  { %v2996_v59 = vpop.f32.mrb[23].mxu1 }
 0x675   :  { %v554_v60 = vpop.f32.mrb[8].mxu0 }
 0x676   :  { %v561_v61 = vpack.c.bf16 %v554_v60, %v506_v56  ;;  %v3001_v62 = vpop.f32.mrb[9].mxu0  ;;  %v878_v56 = vld [vmem:[#allocation2 + $0x34] sm:$0xf] }
 0x677   :  { %v557_v63 = vpop.f32.mrb[10].mxu0  ;;  %v884_v57 = vsel %vm244_vm4, %v878_v56, 0 }
 0x678   :  { %v3002_v2 = vpop.f32.mrb[11].mxu0  ;;  %3006 = vmatmul.mubr.msk.bf16.vlgmr.msra.gmra.mrb[24].mxu1 %vm117_vm2, %v561_v61 }
 0x679   :  { %3016 = vmatpush3.bf16.xpose.msra.mxu1 %v664_v1  ;;  %3017 = vmatprep.mubr.msk.bf16.mxu1 %vm3406_vm0, %v3405_v0 }
 0x67a   :  { %3027 = vmatprep.subr.bf16.mxu1 %v3405_v0 }
 0x67d   :  { %v649_v5 = vpop.f32.mrb[12].mxu0 }
 0x67e   :  { %v3013_v6 = vpop.f32.mrb[13].mxu0 }
 0x67f   :  { %v652_v8 = vpop.f32.mrb[14].mxu0 }
 0x680   :  { %v3014_v9 = vpop.f32.mrb[15].mxu0  ;;  %3018 = vmatmul.mubr.msk.bf16.vlgmr.msra.gmra.mrb[28].mxu1 %vm117_vm2, %v657_v7 }
 0x681   :  { %3029 = vmatprep.mubr.msk.bf16.mxu1 %vm3406_vm0, %v3405_v0 }
 0x686   :  { %v750_v10 = vpop.f32.mrb[16].mxu0 }
 0x687   :  { %v757_v12 = vsel %vm3509_vm3, %v750_v10, -inf  ;;  %v3025_v13 = vpop.f32.mrb[17].mxu0 }
 0x688   :  { %v753_v15 = vpop.f32.mrb[18].mxu0  ;;  %v761_v16 = vsel %vm117_vm2, %v757_v12, -inf }
 0x689   :  { %762 = vmax.xlane.f32.xlu1 %v761_v16  ;;  %v3026_v17 = vpop.f32.mrb[19].mxu0 }
 0x69a   :  { %782 = vrot.lane.b32.xlu1 %v3489_v11, %s3414_s18 }
 0x69e   :  { %931 = vrot.lane.b32.xlu1 %v3489_v11, %s3415_s19 }
 0x6a2   :  { %981 = vrot.lane.b32.xlu1 %v3493_v14, %s3415_s19 }
 0x6a6   :  { %979 = vrot.lane.b32.xlu1 %v3493_v14, %s3416_s20 }
 0x716   :  { %v763_v18 = vpop.xlane.xlu1 %762 }
 0x717   :  { %v765_v21 = vsub.f32 %v757_v12, %v763_v18 }
 0x719   :  { %v768_v23 = vmul.f32 1.442695, %v765_v21 }
 0x71a   :  { %v783_v19 = vpop.permute.xlu1 %782 }
 0x71b   :  { %v788_v20 = vsel %vm244_vm4, %v783_v19, 0  ;;  %3290 = vpow2.f32 %v768_v23 }
 0x71c   :  { %3028 = vmatpush3.bf16.msra.mxu1 %v788_v20 }
 0x71d   :  { %3039 = vmatprep.subr.bf16.mxu1 %v3405_v0 }
 0x71e   :  { %v932_v51 = vpop.permute.xlu1 %931 }
 0x71f   :  { %v937_v53 = vsel %vm117_vm2, %v932_v51, 0 }
 0x722   :  { %v982_v62 = vpop.permute.xlu1 %981 }
 0x723   :  { %v987_v6 = vsel %vm117_vm2, %v982_v62, 0 }
 0x725   :  { %v3291_v35 = vpop.eup %3290 }
 0x726   :  { %v773_v37 = vsel %vm117_vm2, %v3291_v35, 0.0  ;;  %v980_v16 = vpop.permute.xlu1 %979 }
 0x74b   :  { %v602_v24 = vpop.f32.mrb[24].mxu1 }
 0x74c   :  { %v3621_v25 = vadd.f32 %v649_v5, %v602_v24  ;;  %v3007_v26 = vpop.f32.mrb[25].mxu1 }
 0x74d   :  { %v605_v27 = vpop.f32.mrb[26].mxu1 }
 0x74e   :  { %v3623_v28 = vadd.f32 %v652_v8, %v605_v27  ;;  %v3008_v29 = vpop.f32.mrb[27].mxu1 }
 0x753   :  { %v700_v30 = vpop.f32.mrb[28].mxu1 }
 0x754   :  { %v756_v31 = vsel %vm3509_vm3, %v700_v30, -inf  ;;  %v3019_v32 = vpop.f32.mrb[29].mxu1 }
 0x755   :  { %v703_v33 = vpop.f32.mrb[30].mxu1  ;;  %v758_v34 = vsel %vm117_vm2, %v756_v31, -inf }
 0x756   :  { %759 = vmax.xlane.f32.xlu0 %v758_v34  ;;  %v3020_v36 = vpop.f32.mrb[31].mxu1 }
 0x75a   :  { %774 = vadd.xlane.f32.xlu0 %v773_v37 }
 0x7e3   :  { %v760_v38 = vpop.xlane.xlu0 %759 }
 0x7e4   :  { %v764_v39 = vsub.f32 %v756_v31, %v760_v38 }
 0x7e6   :  { %v766_v40 = vmul.f32 1.442695, %v764_v39 }
 0x7e7   :  { %v775_v43 = vpop.xlane.xlu0 %774 }
 0x7e8   :  { %3292 = vpow2.f32 %v766_v40 }
 0x7e9   :  { %3294 = vrcp.f32 %v775_v43 }
 0x7f2   :  { %v3293_v41 = vpop.eup %3292 }
 0x7f3   :  { %v770_v42 = vsel %vm117_vm2, %v3293_v41, 0.0  ;;  %v3295_v44 = vpop.eup %3294 }
 0x7f4   :  { %771 = vadd.xlane.f32.xlu0 %v770_v42  ;;  %v779_v46 = vmul.f32 %v3295_v44, %v3291_v35  ;;  %v1151_v44 = vld [vmem:[#allocation2 + $0x4c] sm:$0xf] }
 0x7f6   :  { %v781_v49 = vpack.c.bf16 %v779_v46, %v779_v46 }
 0x80a   :  { %830 = vrot.lane.b32.xlu0 %v3493_v14, %s3414_s18 }
 0x80e   :  { %929 = vrot.lane.b32.xlu0 %v3489_v11, %s3416_s20 }
 0x881   :  { %v772_v45 = vpop.xlane.xlu0 %771 }
 0x882   :  { %3296 = vrcp.f32 %v772_v45  ;;  %v1157_v45 = vsel %vm244_vm4, %v1151_v44, 0  ;;  %v2799_v44 = vld [vmem:[%s3992_s4 + $0x8] ss:$0 sm:$0xff] }
 0x885   :  { %v831_v47 = vpop.permute.xlu0 %830 }
 0x886   :  { %v836_v48 = vsel %vm244_vm4, %v831_v47, 0 }
 0x887   :  { %3034 = vmatpush3.bf16.msra.mxu0 %v836_v48 }
 0x888   :  { %3045 = vmatprep.subr.bf16.mxu0 %v3405_v0 }
 0x889   :  { %v930_v55 = vpop.permute.xlu0 %929 }
 0x88a   :  { %3036 = vmatmul.mubr.msk.bf16.vlgmr.msra.gmra.mrb[20].mxu0 %vm117_vm2, %v781_v49 }
 0x88b   :  { %3047 = vmatprep.mubr.msk.bf16.mxu0 %vm3406_vm0, %v3405_v0 }
 0x88c   :  { %v3297_v50 = vpop.eup %3296 }
 0x88d   :  { %v778_v52 = vmul.f32 %v3297_v50, %v3293_v41 }
 0x88f   :  { %v780_v54 = vpack.c.bf16 %v778_v52, %v778_v52 }
 0x890   :  { %3046 = vmatpush3.bf16.xpose.msra.mxu0 %v937_v53 }
 0x891   :  { %3030 = vmatmul.mubr.msk.bf16.vlgmr.msra.gmra.mrb[32].mxu1 %vm117_vm2, %v780_v54  ;;  %3057 = vmatprep.subr.bf16.mxu0 %v3405_v0 }
 0x892   :  { %3041 = vmatprep.mubr.msk.bf16.mxu1 %vm3406_vm0, %v3405_v0  ;;  %3040 = vmatpush3.bf16.msra.mxu1 %v884_v57 }
 0x893   :  { %3051 = vmatprep.subr.bf16.mxu1 %v3405_v0 }
 0x897   :  { %3048 = vmatmul.mubr.msk.bf16.vlgmr.msra.gmra.mrb[24].mxu0 %vm117_vm2, %v930_v55 }
 0x898   :  { %3059 = vmatprep.mubr.msk.bf16.mxu0 %vm3406_vm0, %v3405_v0 }
 0x95d   :  { %v872_v58 = vpop.f32.mrb[20].mxu0 }
 0x95e   :  { %v3037_v59 = vpop.f32.mrb[21].mxu0 }
 0x95f   :  { %v875_v60 = vpop.f32.mrb[22].mxu0 }
 0x960   :  { %v3038_v61 = vpop.f32.mrb[23].mxu0 }
 0x961   :  { %v2797_v61 = vld [vmem:[%s3992_s4 + $0x1] ss:$0 sm:$0xff] }
 0x964   :  { %v824_v63 = vpop.f32.mrb[32].mxu1 }
 0x965   :  { %v879_v1 = vpack.c.bf16 %v872_v58, %v824_v63  ;;  %v3031_v2 = vpop.f32.mrb[33].mxu1 }
 0x966   :  { %v827_v5 = vpop.f32.mrb[34].mxu1 }
 0x967   :  { %v3032_v7 = vpop.f32.mrb[35].mxu1  ;;  %3042 = vmatmul.mubr.msk.bf16.vlgmr.msra.gmra.mrb[36].mxu1 %vm117_vm2, %v879_v1 }
 0x968   :  { %3052 = vmatpush3.bf16.xpose.msra.mxu1 %v987_v6  ;;  %3053 = vmatprep.mubr.msk.bf16.mxu1 %vm3406_vm0, %v3405_v0 }
 0x969   :  { %3063 = vmatprep.subr.bf16.mxu1 %v3405_v0 }
 0x96a   :  { %v973_v8 = vpop.f32.mrb[24].mxu0 }
 0x96b   :  { %v1029_v9 = vsel %vm3509_vm3, %v973_v8, -inf  ;;  %v3049_v10 = vpop.f32.mrb[25].mxu0 }
 0x96c   :  { %v976_v12 = vpop.f32.mrb[26].mxu0  ;;  %v1031_v13 = vsel %vm117_vm2, %v1029_v9, -inf }
 0x96d   :  { %1032 = vmax.xlane.f32.xlu0 %v1031_v13  ;;  %v3050_v15 = vpop.f32.mrb[27].mxu0 }
 0x96f   :  { %3054 = vmatmul.mubr.msk.bf16.vlgmr.msra.gmra.mrb[40].mxu1 %vm117_vm2, %v980_v16 }
 0x970   :  { %3065 = vmatprep.mubr.msk.bf16.mxu1 %vm3406_vm0, %v3405_v0 }
 0x9fa   :  { %v1033_v17 = vpop.xlane.xlu0 %1032 }
 0x9fb   :  { %v1037_v18 = vsub.f32 %v1029_v9, %v1033_v17 }
 0x9fd   :  { %v1039_v19 = vmul.f32 1.442695, %v1037_v18  ;;  %v3260_v18 = vld [vmem:[#allocation2 + $0xc] ss:$24 sps:$4 sm:$0xff]  }
 0x9ff   :  { %3298 = vpow2.f32 %v1039_v19  ;;  %v39_v19 = vld [vmem:[%s3989_s1 + $0x8] sm:$0xff] }
 0xa09   :  { %v3299_v20 = vpop.eup %3298 }
 0xa0a   :  { %v1043_v21 = vsel %vm117_vm2, %v3299_v20, 0.0 }
 0xa0b   :  { %1044 = vadd.xlane.f32.xlu0 %v1043_v21  ;;  %v3262_v21 = vld [vmem:[#allocation2 + $0x8] ss:$24 sps:$4 sm:$0xff]  }
 0xa3a   :  { %v920_v23 = vpop.f32.mrb[36].mxu1 }
 0xa3b   :  { %v927_v24 = vadd.f32 %v920_v23, %v3621_v25  ;;  %v3043_v26 = vpop.f32.mrb[37].mxu1  ;;  %v3263_v23 = vld [vmem:[#allocation2 + $0x38] ss:$24 sps:$4 sm:$0xff]  }
 0xa3c   :  { %v923_v27 = vpop.f32.mrb[38].mxu1 }
 0xa3d   :  { %v928_v29 = vadd.f32 %v923_v27, %v3623_v28  ;;  %v3044_v30 = vpop.f32.mrb[39].mxu1 }
 0xa42   :  { %v1023_v31 = vpop.f32.mrb[40].mxu1 }
 0xa43   :  { %v1030_v32 = vsel %vm3509_vm3, %v1023_v31, -inf  ;;  %v3055_v33 = vpop.f32.mrb[41].mxu1 }
 0xa44   :  { %v1026_v34 = vpop.f32.mrb[42].mxu1  ;;  %v1034_v35 = vsel %vm117_vm2, %v1030_v32, -inf }
 0xa45   :  { %1035 = vmax.xlane.f32.xlu1 %v1034_v35  ;;  %v3056_v36 = vpop.f32.mrb[43].mxu1 }
 0xa56   :  { %1055 = vrot.lane.b32.xlu1 %v3489_v11, %s3417_s21 }
 0xa98   :  { %v1045_v37 = vpop.xlane.xlu0 %1044 }
 0xa99   :  { %3300 = vrcp.f32 %v1045_v37 }
 0xaa3   :  { %v3301_v25 = vpop.eup %3300 }
 0xaa4   :  { %v1051_v28 = vmul.f32 %v3301_v25, %v3299_v20 }
 0xaa6   :  { %v1053_v42 = vpack.c.bf16 %v1051_v28, %v1051_v28 }
 0xad2   :  { %v1036_v38 = vpop.xlane.xlu1 %1035 }
 0xad3   :  { %v1038_v39 = vsub.f32 %v1030_v32, %v1036_v38 }
 0xad5   :  { %v1041_v40 = vmul.f32 1.442695, %v1038_v39 }
 0xad6   :  { %v1056_v41 = vpop.permute.xlu1 %1055 }
 0xad7   :  { %3302 = vpow2.f32 %v1041_v40  ;;  %v1061_v22 = vsel %vm244_vm4, %v1056_v41, 0  ;;  %v2798_v40 = vld [vmem:[%s3992_s4 + $0x7] ss:$0 sm:$0xff] }
 0xad8   :  { %3058 = vmatpush3.bf16.msra.mxu0 %v1061_v22 }
 0xad9   :  { %3069 = vmatprep.subr.bf16.mxu0 %v3405_v0 }
 0xadb   :  { %3060 = vmatmul.mubr.msk.bf16.vlgmr.msra.gmra.mrb[28].mxu0 %vm117_vm2, %v1053_v42 }
 0xadc   :  { %3071 = vmatprep.mubr.msk.bf16.mxu0 %vm3406_vm0, %v3405_v0  ;;  %3070 = vmatpush3.bf16.msra.mxu0 %v1157_v45 }
 0xadd   :  { %3083 = vmatprep.subr.bf16.mxu0 %v3405_v0 }
 0xae1   :  { %v3303_v11 = vpop.eup %3302 }
 0xae2   :  { %v1046_v43 = vsel %vm117_vm2, %v3303_v11, 0.0 }
 0xae3   :  { %1047 = vadd.xlane.f32.xlu0 %v1046_v43 }
 0xaf9   :  { %1103 = vrot.lane.b32.xlu0 %v3493_v14, %s3417_s21 }
 0xb70   :  { %v1048_v46 = vpop.xlane.xlu0 %1047 }
 0xb71   :  { %3304 = vrcp.f32 %v1048_v46 }
 0xb74   :  { %v1104_v47 = vpop.permute.xlu0 %1103 }
 0xb75   :  { %v1109_v48 = vsel %vm244_vm4, %v1104_v47, 0 }
 0xb76   :  { %3064 = vmatpush3.bf16.msra.mxu1 %v1109_v48 }
 0xb77   :  { %3075 = vmatprep.subr.bf16.mxu1 %v3405_v0 }
 0xb7b   :  { %v3305_v49 = vpop.eup %3304 }
 0xb7c   :  { %v1052_v50 = vmul.f32 %v3305_v49, %v3303_v11  ;;  %v2804_v49 = vld [vmem:[%s3992_s4 + $0x3] ss:$0 sm:$0xff] }
 0xb7e   :  { %v1054_v51 = vpack.c.bf16 %v1052_v50, %v1052_v50 }
 0xb80   :  { %3066 = vmatmul.mubr.msk.bf16.vlgmr.msra.gmra.mrb[44].mxu1 %vm117_vm2, %v1054_v51 }
 0xb81   :  { %3079 = vmatprep.mubr.msk.bf16.mxu1 %vm3406_vm0, %v3405_v0  ;;  %3076 = vmatpush3.bf16.msra.mxu1 %v3262_v21 }
 0xb82   :  { %3077 = vmatprep.subr.bf16.mxu1 %v3405_v0 }
 0xb85   :  { %3078 = vmatpush3.bf16.msra.mxu1 %v3263_v23 }
 0xb86   :  { %3091 = vmatprep.subr.bf16.mxu1 %v3405_v0 }
 0xbae   :  { %v1097_v14 = vpop.f32.mrb[28].mxu0 }
 0xbaf   :  { %v3061_v52 = vpop.f32.mrb[29].mxu0 }
 0xbb0   :  { %v1100_v53 = vpop.f32.mrb[30].mxu0 }
 0xbb1   :  { %v3062_v54 = vpop.f32.mrb[31].mxu0 }
 0xc53   :  { %v1145_v55 = vpop.f32.mrb[44].mxu1 }
 0xc54   :  { %v1152_v56 = vpack.c.bf16 %v1145_v55, %v1097_v14  ;;  %v3067_v57 = vpop.f32.mrb[45].mxu1 }
 0xc55   :  { %v1148_v58 = vpop.f32.mrb[46].mxu1 }
 0xc56   :  { %v3068_v59 = vpop.f32.mrb[47].mxu1  ;;  %3072 = vmatmul.mubr.msk.bf16.vlgmr.msra.gmra.mrb[32].mxu0 %vm117_vm2, %v1152_v56 }
 0xc57   :  { %3087 = vmatprep.mubr.msk.bf16.mxu0 %vm3406_vm0, %v3405_v0  ;;  %3084 = vmatpush3.bf16.msra.mxu0 %v3260_v18  ;;  %v2800_v59 = vld [vmem:[%s3992_s4 + $0x2] ss:$0 sm:$0xff] }
 0xc58   :  { %3085 = vmatprep.subr.bf16.mxu0 %v3405_v0 }
 0xd29   :  { %v1193_v60 = vpop.f32.mrb[32].mxu0 }
 0xd2a   :  { %v1200_v62 = vadd.f32 %v1193_v60, %v927_v24  ;;  %v3073_v63 = vpop.f32.mrb[33].mxu0 }
 0xd2b   :  { %v1196_v1 = vpop.f32.mrb[34].mxu0 }
 0xd2c   :  { %v1207_v2 = vadd.f32 %v2797_v61, %v1200_v62  ;;  %v1201_v5 = vadd.f32 %v1196_v1, %v928_v29  ;;  %v3074_v6 = vpop.f32.mrb[35].mxu0 }
 0xd2e   :  { %v1209_v7 = vadd.f32 %v1207_v2, %v3472_v3  ;;  %v1208_v8 = vadd.f32 %v2797_v61, %v1201_v5  ;;  %v3261_v3 = vld [vmem:[#allocation2 + $0x3c] ss:$24 sps:$4 sm:$0xff]  }
 0xd2f   :  { %3086 = vmatpush3.bf16.msra.mxu0 %v3261_v3 }
 0xd30   :  { %v1210_v9 = vadd.f32 %v1208_v8, %v3477_v4  ;;  %v1213_v10 = vsel %vm67_vm1, %v1209_v7, 0.0  ;;  %v1222_v12 = vmul.f32 %v1209_v7, %v1209_v7  ;;  %v38_v4 = vld [vmem:[%s3989_s1] sm:$0xff]  ;;  %3097 = vmatprep.subr.bf16.mxu0 %v3405_v0 }
 0xd31   :  { %1214 = vadd.xlane.f32.xlu1 %v1213_v10  ;;  %v1322_v20 = vpack.c.bf16 %v39_v19, %v38_v4 }
 0xd32   :  { %v1216_v13 = vsel %vm67_vm1, %v1210_v9, 0.0  ;;  %v1223_v15 = vmul.f32 %v1210_v9, %v1210_v9  ;;  %v1224_v16 = vsel %vm67_vm1, %v1222_v12, 0.0 }
 0xd33   :  { %1217 = vadd.xlane.f32.xlu0 %v1216_v13  ;;  %3088 = vmatmul.mubr.msk.bf16.vlgmr.msra.gmra.mrb[36].mxu0 %vm67_vm1, %v1322_v20 }
 0xd34   :  { %v1227_v17 = vsel %vm67_vm1, %v1223_v15, 0.0  ;;  %3099 = vmatprep.mubr.msk.bf16.mxu0 %vm3406_vm0, %v3405_v0 }
 0xd35   :  { %1225 = vadd.xlane.f32.xlu1 %v1224_v16 }
 0xd37   :  { %1228 = vadd.xlane.f32.xlu0 %v1227_v17 }
 0xdbe   :  { %v1215_v24 = vpop.xlane.xlu1 %1214 }
 0xdbf   :  { %v1220_v26 = vmul.f32 0.03125, %v1215_v24 }
 0xdc0   :  { %v1218_v27 = vpop.xlane.xlu0 %1217 }
 0xdc1   :  { %v1221_v29 = vmul.f32 0.03125, %v1218_v27  ;;  %v1232_v31 = vmul.f32 %v1220_v26, %v1220_v26  ;;  %v1236_v39 = vsub.f32 %v1209_v7, %v1220_v26 }
 0xdc2   :  { %v1226_v30 = vpop.xlane.xlu1 %1225 }
 0xdc3   :  { %v1230_v32 = vmul.f32 0.03125, %v1226_v30  ;;  %v1233_v34 = vmul.f32 %v1221_v29, %v1221_v29  ;;  %v1237_v41 = vsub.f32 %v1210_v9, %v1221_v29 }
 0xdc4   :  { %v1229_v33 = vpop.xlane.xlu0 %1228 }
 0xdc5   :  { %v1234_v35 = vsub.f32 %v1230_v32, %v1232_v31  ;;  %v1231_v36 = vmul.f32 0.03125, %v1229_v33 }
 0xdc7   :  { %v1238_v37 = vadd.f32 1e-05, %v1234_v35  ;;  %v1235_v25 = vsub.f32 %v1231_v36, %v1233_v34 }
 0xdc9   :  { %3306 = vrsqrt.f32 %v1238_v37  ;;  %v1239_v38 = vadd.f32 1e-05, %v1235_v25 }
 0xdcb   :  { %3308 = vrsqrt.f32 %v1239_v38 }
 0xdd3   :  { %v3307_v28 = vpop.eup %3306 }
 0xdd4   :  { %v1242_v22 = vmul.f32 %v3307_v28, %v1236_v39 }
 0xdd5   :  { %v3309_v42 = vpop.eup %3308 }
 0xdd6   :  { %v1243_v11 = vmul.f32 %v3309_v42, %v1237_v41  ;;  %v1248_v43 = vmul.f32 %v2798_v40, %v1242_v22 }
 0xdd8   :  { %v1249_v45 = vmul.f32 %v2798_v40, %v1243_v11  ;;  %v3712_v46 = vadd.f32 %v2799_v44, %v1248_v43 }
 0xdda   :  { %v3714_v47 = vadd.f32 %v2799_v44, %v1249_v45 }
 0xddc   :  { %v1256_v48 = vpack.c.bf16 %v3714_v47, %v3712_v46 }
 0xdde   :  { %3080 = vmatmul.mubr.msk.bf16.vlgmr.msra.gmra.mrb[48].mxu1 %vm67_vm1, %v1256_v48 }
 0xddf   :  { %3093 = vmatprep.mubr.msk.bf16.mxu1 %vm3406_vm0, %v3405_v0 }
 0xe06   :  { %v1381_v50 = vpop.f32.mrb[36].mxu0 }
 0xe07   :  { %v1382_v51 = vadd.f32 %v2804_v49, %v1381_v50  ;;  %v3089_v14 = vpop.f32.mrb[37].mxu0 }
 0xe08   :  { %v1384_v52 = vpop.f32.mrb[38].mxu0 }
 0xe09   :  { %v3724_v53 = vpack.c.bf16 %v1382_v51, %v1382_v51  ;;  %v1385_v54 = vadd.f32 %v2804_v49, %v1384_v52  ;;  %v3090_v55 = vpop.f32.mrb[39].mxu0 }
 0xe0b   :  { %v3726_v56 = vpack.c.bf16 %v1385_v54, %v1385_v54  ;;  %v1396_v57 = vsel %vm117_vm2, %v3724_v53, 0 }
 0xe0c   :  { %3092 = vmatpush3.bf16.xpose.msra.mxu1 %v1396_v57 }
 0xe0d   :  { %v1442_v58 = vsel %vm117_vm2, %v3726_v56, 0  ;;  %3103 = vmatprep.subr.bf16.mxu1 %v3405_v0 }
 0xe0e   :  { %3098 = vmatpush3.bf16.xpose.msra.mxu0 %v1442_v58 }
 0xe0f   :  { %3109 = vmatprep.subr.bf16.mxu0 %v3405_v0 }
 0xeb1   :  { %v1315_v60 = vpop.f32.mrb[48].mxu1 }
 0xeb2   :  { %v1316_v61 = vadd.f32 %v2800_v59, %v1315_v60  ;;  %v3081_v62 = vpop.f32.mrb[49].mxu1 }
 0xeb3   :  { %v1318_v63 = vpop.f32.mrb[50].mxu1 }
 0xeb4   :  { %v3737_v1 = vpack.c.bf16 %v1316_v61, %v1316_v61  ;;  %v1319_v2 = vadd.f32 %v2800_v59, %v1318_v63  ;;  %v3082_v5 = vpop.f32.mrb[51].mxu1 }
 0xeb6   :  { %v3739_v6 = vpack.c.bf16 %v1319_v2, %v1319_v2  ;;  %3094 = vmatmul.mubr.msk.bf16.vlgmr.msra.gmra.mrb[52].mxu1 %vm117_vm2, %v3737_v1 }
 0xeb7   :  { %3105 = vmatprep.mubr.msk.bf16.mxu1 %vm3406_vm0, %v3405_v0 }
 0xeb8   :  { %3100 = vmatmul.mubr.msk.bf16.vlgmr.msra.gmra.mrb[40].mxu0 %vm117_vm2, %v3739_v6 }
 0xeb9   :  { %3111 = vmatprep.mubr.msk.bf16.mxu0 %vm3406_vm0, %v3405_v0 }
 0xf89   :  { %v1432_v7 = vpop.f32.mrb[52].mxu1 }
 0xf8a   :  { %v3095_v8 = vpop.f32.mrb[53].mxu1  ;;  %v1484_v9 = vsel %vm117_vm2, %v1432_v7, -inf }
 0xf8b   :  { %v1478_v10 = vpop.f32.mrb[40].mxu0  ;;  %1485 = vmax.xlane.f32.xlu1 %v1484_v9  ;;  %v1435_v12 = vpop.f32.mrb[54].mxu1 }
 0xf8c   :  { %v3096_v13 = vpop.f32.mrb[55].mxu1  ;;  %v3101_v15 = vpop.f32.mrb[41].mxu0  ;;  %v1487_v16 = vsel %vm117_vm2, %v1478_v10, -inf }
 0xf8d   :  { %1488 = vmax.xlane.f32.xlu0 %v1487_v16  ;;  %v1481_v17 = vpop.f32.mrb[42].mxu0 }
 0xf8e   :  { %v3102_v18 = vpop.f32.mrb[43].mxu0 }
 0xf9c   :  { %1509 = vrot.lane.b32.xlu1 %v3724_v53, %s3407_s0 }
0x1018   :  { %v1486_v3 = vpop.xlane.xlu1 %1485 }
0x1019   :  { %v1490_v4 = vsub.f32 %v1432_v7, %v1486_v3 }
0x101a   :  { %v1489_v19 = vpop.xlane.xlu0 %1488 }
0x101b   :  { %v1492_v20 = vmul.f32 1.442695, %v1490_v4  ;;  %v1491_v21 = vsub.f32 %v1478_v10, %v1489_v19 }
0x101c   :  { %v1510_v23 = vpop.permute.xlu1 %1509 }
0x101d   :  { %3310 = vpow2.f32 %v1492_v20  ;;  %v1494_v24 = vmul.f32 1.442695, %v1491_v21  ;;  %v1515_v26 = vsel %vm244_vm4, %v1510_v23, 0 }
0x101e   :  { %3104 = vmatpush3.bf16.msra.mxu1 %v1515_v26  ;;  %v1830_v26 = vld [vmem:[#allocation2 + $0x28] sm:$0xf] }
0x101f   :  { %3312 = vpow2.f32 %v1494_v24  ;;  %3115 = vmatprep.subr.bf16.mxu1 %v3405_v0 }
0x1027   :  { %v3311_v27 = vpop.eup %3310 }
0x1028   :  { %v1496_v29 = vsel %vm117_vm2, %v3311_v27, 0.0 }
0x1029   :  { %v3313_v30 = vpop.eup %3312  ;;  %1497 = vadd.xlane.f32.xlu1 %v1496_v29 }
0x102a   :  { %v1499_v31 = vsel %vm117_vm2, %v3313_v30, 0.0 }
0x102b   :  { %1500 = vadd.xlane.f32.xlu0 %v1499_v31 }
0x103a   :  { %1611 = vrot.lane.b32.xlu1 %v3724_v53, %s3410_s14 }
0x103e   :  { %1662 = vrot.lane.b32.xlu1 %v3726_v56, %s3410_s14 }
0x1041   :  { %1558 = vrot.lane.b32.xlu0 %v3726_v56, %s3407_s0  ;;  %s3376_s0 = scalar_lea.vmem %s2762_s11, 256 }
0x1042   :  { %1660 = vrot.lane.b32.xlu1 %v3739_v6, %s3410_s14  ;;  %p3377_p8 = scmp.ne.s32.totalorder %s2762_s11, %s3376_s0  ;;  %p3382_p10 = scmp.lt.s32.totalorder %s3376_s0, %s3376_s0 }
0x1044   :  { %p3383_p11 = por %p3382_p10, %p3381_p9 }
0x1045   :  { %1609 = vrot.lane.b32.xlu0 %v3737_v1, %s3410_s14 }
0x1046   :  { %p3384_p12 = pnand %p3383_p11, %p3377_p8 }
0x10b6   :  { %v1498_v32 = vpop.xlane.xlu1 %1497 }
0x10b7   :  { %3314 = vrcp.f32 %v1498_v32  ;;  %v1606_v32 = vld [vmem:[#allocation2 + $0x10] sm:$0xf] }
0x10b8   :  { %v1501_v33 = vpop.xlane.xlu0 %1500 }
0x10b9   :  { %3316 = vrcp.f32 %v1501_v33 }
0x10ba   :  { %v1612_v36 = vpop.permute.xlu1 %1611 }
0x10bb   :  { %v1617_v41 = vsel %vm117_vm2, %v1612_v36, 0 }
0x10bc   :  { %v1559_v34 = vpop.permute.xlu0 %1558 }
0x10bd   :  { %v1564_v35 = vsel %vm244_vm4, %v1559_v34, 0 }
0x10be   :  { %3110 = vmatpush3.bf16.msra.mxu0 %v1564_v35  ;;  %v1663_v40 = vpop.permute.xlu1 %1662  ;;  %v1883_v35 = vsel %vm244_vm4, %v1606_v32, 0 }
0x10bf   :  { %3121 = vmatprep.subr.bf16.mxu0 %v3405_v0  ;;  %v1668_v42 = vsel %vm117_vm2, %v1663_v40, 0 }
0x10c0   :  { %v1610_v11 = vpop.permute.xlu0 %1609 }
0x10c1   :  { %v3315_v37 = vpop.eup %3314 }
0x10c2   :  { %v1504_v25 = vmul.f32 %v3315_v37, %v3311_v27  ;;  %v1661_v43 = vpop.permute.xlu1 %1660 }
0x10c3   :  { %v3317_v38 = vpop.eup %3316 }
0x10c4   :  { %v1505_v39 = vmul.f32 %v3317_v38, %v3313_v30  ;;  %v1506_v28 = vpack.c.bf16 %v1504_v25, %v1504_v25  ;;  %v1836_v30 = vsel %vm244_vm4, %v1830_v26, 0 }
0x10c6   :  { %3106 = vmatmul.mubr.msk.bf16.vlgmr.msra.gmra.mrb[56].mxu1 %vm117_vm2, %v1506_v28  ;;  %v1507_v22 = vpack.c.bf16 %v1505_v39, %v1505_v39 }
0x10c7   :  { %3116 = vmatpush3.bf16.xpose.msra.mxu1 %v1617_v41  ;;  %3117 = vmatprep.mubr.msk.bf16.mxu1 %vm3406_vm0, %v3405_v0 }
0x10c8   :  { %3112 = vmatmul.mubr.msk.bf16.vlgmr.msra.gmra.mrb[44].mxu0 %vm117_vm2, %v1507_v22  ;;  %3127 = vmatprep.subr.bf16.mxu1 %v3405_v0 }
0x10c9   :  { %3122 = vmatpush3.bf16.xpose.msra.mxu0 %v1668_v42  ;;  %3123 = vmatprep.mubr.msk.bf16.mxu0 %vm3406_vm0, %v3405_v0 }
0x10ca   :  { %3133 = vmatprep.subr.bf16.mxu0 %v3405_v0 }
0x10ce   :  { %3118 = vmatmul.mubr.msk.bf16.vlgmr.msra.gmra.mrb[60].mxu1 %vm117_vm2, %v1610_v11 }
0x10cf   :  { %3129 = vmatprep.mubr.msk.bf16.mxu1 %vm3406_vm0, %v3405_v0 }
0x10d0   :  { %3124 = vmatmul.mubr.msk.bf16.vlgmr.msra.gmra.mrb[48].mxu0 %vm117_vm2, %v1661_v43 }
0x10d1   :  { %3135 = vmatprep.mubr.msk.bf16.mxu0 %vm3406_vm0, %v3405_v0 }
0x1199   :  { %v3785_v44 = vpop.f32.mrb[56].mxu1 }
0x119a   :  { %v3107_v45 = vpop.f32.mrb[57].mxu1 }
0x119b   :  { %v1554_v48 = vpop.f32.mrb[58].mxu1  ;;  %v3787_v49 = vpop.f32.mrb[44].mxu0 }
0x119c   :  { %v1607_v50 = vpack.c.bf16 %v3787_v49, %v3785_v44  ;;  %v3108_v51 = vpop.f32.mrb[59].mxu1  ;;  %v3113_v14 = vpop.f32.mrb[45].mxu0 }
0x119d   :  { %v1603_v52 = vpop.f32.mrb[46].mxu0 }
0x119e   :  { %v3114_v54 = vpop.f32.mrb[47].mxu0 }
0x11a1   :  { %v1653_v55 = vpop.f32.mrb[60].mxu1 }
0x11a2   :  { %v3119_v57 = vpop.f32.mrb[61].mxu1  ;;  %v1710_v58 = vsel %vm117_vm2, %v1653_v55, -inf }
0x11a3   :  { %v1704_v59 = vpop.f32.mrb[48].mxu0  ;;  %1711 = vmax.xlane.f32.xlu0 %v1710_v58  ;;  %v1656_v60 = vpop.f32.mrb[62].mxu1 }
0x11a4   :  { %v3120_v61 = vpop.f32.mrb[63].mxu1  ;;  %v3125_v62 = vpop.f32.mrb[49].mxu0  ;;  %v1713_v63 = vsel %vm117_vm2, %v1704_v59, -inf }
0x11a5   :  { %1714 = vmax.xlane.f32.xlu1 %v1713_v63  ;;  %v1707_v2 = vpop.f32.mrb[50].mxu0 }
0x11a6   :  { %v3126_v5 = vpop.f32.mrb[51].mxu0 }
0x11b6   :  { %1734 = vrot.lane.b32.xlu1 %v3724_v53, %s3409_s13 }
0x11ba   :  { %1928 = vrot.lane.b32.xlu1 %v3724_v53, %s3412_s16 }
0x11be   :  { %1978 = vrot.lane.b32.xlu1 %v3726_v56, %s3412_s16 }
0x11c2   :  { %1976 = vrot.lane.b32.xlu1 %v3739_v6, %s3412_s16 }
0x1230   :  { %v1712_v7 = vpop.xlane.xlu0 %1711 }
0x1231   :  { %v1716_v8 = vsub.f32 %v1653_v55, %v1712_v7 }
0x1232   :  { %v1715_v9 = vpop.xlane.xlu1 %1714 }
0x1233   :  { %v1718_v10 = vmul.f32 1.442695, %v1716_v8  ;;  %v1717_v12 = vsub.f32 %v1704_v59, %v1715_v9 }
0x1235   :  { %3318 = vpow2.f32 %v1718_v10  ;;  %v1720_v13 = vmul.f32 1.442695, %v1717_v12 }
0x1236   :  { %v1735_v15 = vpop.permute.xlu1 %1734 }
0x1237   :  { %3320 = vpow2.f32 %v1720_v13  ;;  %v1740_v16 = vsel %vm244_vm4, %v1735_v15, 0 }
0x1238   :  { %3128 = vmatpush3.bf16.msra.mxu1 %v1740_v16 }
0x1239   :  { %3139 = vmatprep.subr.bf16.mxu1 %v3405_v0 }
0x123a   :  { %v1929_v36 = vpop.permute.xlu1 %1928 }
0x123b   :  { %v1934_v44 = vsel %vm117_vm2, %v1929_v36, 0 }
0x123e   :  { %v1979_v37 = vpop.permute.xlu1 %1978 }
0x123f   :  { %v3319_v17 = vpop.eup %3318  ;;  %v1984_v25 = vsel %vm117_vm2, %v1979_v37, 0  ;;  %v2146_v37 = vld [vmem:[#allocation2 + $0x40] sm:$0xf] }
0x1240   :  { %v1722_v18 = vsel %vm117_vm2, %v3319_v17, 0.0 }
0x1241   :  { %v3321_v3 = vpop.eup %3320  ;;  %1723 = vadd.xlane.f32.xlu0 %v1722_v18 }
0x1242   :  { %v1725_v4 = vsel %vm117_vm2, %v3321_v3, 0.0  ;;  %v1977_v38 = vpop.permute.xlu1 %1976 }
0x1245   :  { %1726 = vadd.xlane.f32.xlu0 %v1725_v4 }
0x125b   :  { %1782 = vrot.lane.b32.xlu0 %v3726_v56, %s3409_s13 }
0x125f   :  { %1926 = vrot.lane.b32.xlu0 %v3737_v1, %s3412_s16 }
0x12ce   :  { %v1724_v19 = vpop.xlane.xlu0 %1723 }
0x12cf   :  { %3322 = vrcp.f32 %v1724_v19 }
0x12d2   :  { %v1727_v20 = vpop.xlane.xlu0 %1726 }
0x12d3   :  { %3324 = vrcp.f32 %v1727_v20 }
0x12d6   :  { %v1783_v21 = vpop.permute.xlu0 %1782 }
0x12d7   :  { %v1788_v23 = vsel %vm244_vm4, %v1783_v21, 0 }
0x12d8   :  { %3134 = vmatpush3.bf16.msra.mxu0 %v1788_v23 }
0x12d9   :  { %v3323_v24 = vpop.eup %3322  ;;  %3145 = vmatprep.subr.bf16.mxu0 %v3405_v0 }
0x12da   :  { %v1730_v27 = vmul.f32 %v3323_v24, %v3319_v17 }
0x12dc   :  { %v1732_v29 = vpack.c.bf16 %v1730_v27, %v1730_v27 }
0x12dd   :  { %v3325_v31 = vpop.eup %3324 }
0x12de   :  { %v1731_v33 = vmul.f32 %v3325_v31, %v3321_v3  ;;  %3130 = vmatmul.mubr.msk.bf16.vlgmr.msra.gmra.mrb[64].mxu1 %vm117_vm2, %v1732_v29 }
0x12df   :  { %3140 = vmatpush3.bf16.msra.mxu1 %v1836_v30  ;;  %3141 = vmatprep.mubr.msk.bf16.mxu1 %vm3406_vm0, %v3405_v0 }
0x12e0   :  { %v1733_v34 = vpack.c.bf16 %v1731_v33, %v1731_v33  ;;  %3151 = vmatprep.subr.bf16.mxu1 %v3405_v0 }
0x12e2   :  { %3136 = vmatmul.mubr.msk.bf16.vlgmr.msra.gmra.mrb[52].mxu0 %vm117_vm2, %v1733_v34 }
0x12e3   :  { %3146 = vmatpush3.bf16.msra.mxu0 %v1883_v35  ;;  %3147 = vmatprep.mubr.msk.bf16.mxu0 %vm3406_vm0, %v3405_v0 }
0x12e4   :  { %3157 = vmatprep.subr.bf16.mxu0 %v3405_v0 }
0x12ea   :  { %3148 = vmatmul.mubr.msk.bf16.vlgmr.msra.gmra.mrb[56].mxu0 %vm117_vm2, %v1607_v50  ;;  %v1927_v50 = vpop.permute.xlu0 %1926 }
0x12eb   :  { %3159 = vmatprep.mubr.msk.bf16.mxu0 %vm3406_vm0, %v3405_v0 }
0x12ec   :  { %3158 = vmatpush3.bf16.xpose.msra.mxu0 %v1984_v25  ;;  %v2152_v25 = vsel %vm244_vm4, %v2146_v37, 0 }
0x12ed   :  { %3169 = vmatprep.subr.bf16.mxu0 %v3405_v0 }
0x12f3   :  { %3160 = vmatmul.mubr.msk.bf16.vlgmr.msra.gmra.mrb[60].mxu0 %vm117_vm2, %v1977_v38 }
0x12f4   :  { %3171 = vmatprep.mubr.msk.bf16.mxu0 %vm3406_vm0, %v3405_v0 }
0x13b1   :  { %v1776_v39 = vpop.f32.mrb[64].mxu1 }
0x13b2   :  { %v3131_v28 = vpop.f32.mrb[65].mxu1 }
0x13b3   :  { %v1779_v40 = vpop.f32.mrb[66].mxu1 }
0x13b4   :  { %v3132_v41 = vpop.f32.mrb[67].mxu1 }
0x13b5   :  { %v1824_v22 = vpop.f32.mrb[52].mxu0 }
0x13b6   :  { %v1831_v42 = vpack.c.bf16 %v1824_v22, %v1776_v39  ;;  %v3137_v11 = vpop.f32.mrb[53].mxu0 }
0x13b7   :  { %v1827_v43 = vpop.f32.mrb[54].mxu0 }
0x13b8   :  { %v3138_v45 = vpop.f32.mrb[55].mxu0  ;;  %3142 = vmatmul.mubr.msk.bf16.vlgmr.msra.gmra.mrb[68].mxu1 %vm117_vm2, %v1831_v42 }
0x13b9   :  { %3152 = vmatpush3.bf16.xpose.msra.mxu1 %v1934_v44  ;;  %3153 = vmatprep.mubr.msk.bf16.mxu1 %vm3406_vm0, %v3405_v0 }
0x13ba   :  { %3163 = vmatprep.subr.bf16.mxu1 %v3405_v0 }
0x13bd   :  { %v1919_v48 = vpop.f32.mrb[56].mxu0 }
0x13be   :  { %v3149_v49 = vpop.f32.mrb[57].mxu0 }
0x13bf   :  { %v1922_v51 = vpop.f32.mrb[58].mxu0 }
0x13c0   :  { %v3150_v14 = vpop.f32.mrb[59].mxu0  ;;  %3154 = vmatmul.mubr.msk.bf16.vlgmr.msra.gmra.mrb[72].mxu1 %vm117_vm2, %v1927_v50 }
0x13c1   :  { %3165 = vmatprep.mubr.msk.bf16.mxu1 %vm3406_vm0, %v3405_v0 }
0x13c6   :  { %v2020_v52 = vpop.f32.mrb[60].mxu0 }
0x13c7   :  { %v3161_v54 = vpop.f32.mrb[61].mxu0  ;;  %v2029_v55 = vsel %vm117_vm2, %v2020_v52, -inf }
0x13c8   :  { %2030 = vmax.xlane.f32.xlu1 %v2029_v55  ;;  %v2023_v57 = vpop.f32.mrb[62].mxu0 }
0x13c9   :  { %v3162_v58 = vpop.f32.mrb[63].mxu0 }
0x13d9   :  { %2050 = vrot.lane.b32.xlu1 %v3724_v53, %s3413_s17 }
0x13dd   :  { %2199 = vrot.lane.b32.xlu1 %v3724_v53, %s3416_s20 }
0x13e1   :  { %2249 = vrot.lane.b32.xlu1 %v3726_v56, %s3416_s20 }
0x13e5   :  { %2247 = vrot.lane.b32.xlu1 %v3739_v6, %s3416_s20 }
0x1455   :  { %v2031_v59 = vpop.xlane.xlu1 %2030 }
0x1456   :  { %v2033_v62 = vsub.f32 %v2020_v52, %v2031_v59 }
0x1458   :  { %v2036_v63 = vmul.f32 1.442695, %v2033_v62 }
0x1459   :  { %v2051_v60 = vpop.permute.xlu1 %2050 }
0x145a   :  { %v2056_v61 = vsel %vm244_vm4, %v2051_v60, 0  ;;  %3326 = vpow2.f32 %v2036_v63 }
0x145b   :  { %3164 = vmatpush3.bf16.msra.mxu1 %v2056_v61 }
0x145c   :  { %3175 = vmatprep.subr.bf16.mxu1 %v3405_v0 }
0x1464   :  { %v3327_v15 = vpop.eup %3326 }
0x1465   :  { %v2041_v18 = vsel %vm117_vm2, %v3327_v15, 0.0 }
0x148b   :  { %v1872_v2 = vpop.f32.mrb[68].mxu1 }
0x148c   :  { %v3851_v5 = vadd.f32 %v1919_v48, %v1872_v2  ;;  %v3143_v7 = vpop.f32.mrb[69].mxu1 }
0x148d   :  { %v1875_v8 = vpop.f32.mrb[70].mxu1 }
0x148e   :  { %v3853_v9 = vadd.f32 %v1922_v51, %v1875_v8  ;;  %v3144_v10 = vpop.f32.mrb[71].mxu1 }
0x1493   :  { %v1970_v12 = vpop.f32.mrb[72].mxu1 }
0x1494   :  { %v3155_v6 = vpop.f32.mrb[73].mxu1  ;;  %v2026_v13 = vsel %vm117_vm2, %v1970_v12, -inf }
0x1495   :  { %2027 = vmax.xlane.f32.xlu0 %v2026_v13  ;;  %v1973_v16 = vpop.f32.mrb[74].mxu1 }
0x1496   :  { %v3156_v17 = vpop.f32.mrb[75].mxu1 }
0x1499   :  { %2042 = vadd.xlane.f32.xlu0 %v2041_v18 }
0x1522   :  { %v2028_v3 = vpop.xlane.xlu0 %2027 }
0x1523   :  { %v2032_v4 = vsub.f32 %v1970_v12, %v2028_v3 }
0x1525   :  { %v2034_v19 = vmul.f32 1.442695, %v2032_v4 }
0x1526   :  { %v2043_v23 = vpop.xlane.xlu0 %2042 }
0x1527   :  { %3328 = vpow2.f32 %v2034_v19 }
0x1528   :  { %3330 = vrcp.f32 %v2043_v23 }
0x1531   :  { %v3329_v20 = vpop.eup %3328 }
0x1532   :  { %v2038_v21 = vsel %vm117_vm2, %v3329_v20, 0.0  ;;  %v3331_v24 = vpop.eup %3330 }
0x1533   :  { %2039 = vadd.xlane.f32.xlu0 %v2038_v21  ;;  %v2047_v27 = vmul.f32 %v3331_v24, %v3327_v15  ;;  %v2417_v21 = vld [vmem:[#allocation2 + $0x58] sm:$0xf] }
0x1534   :  { %v2423_v23 = vsel %vm244_vm4, %v2417_v21, 0 }
0x1535   :  { %v2049_v31 = vpack.c.bf16 %v2047_v27, %v2047_v27 }
0x1549   :  { %2098 = vrot.lane.b32.xlu0 %v3726_v56, %s3413_s17 }
0x154d   :  { %2197 = vrot.lane.b32.xlu0 %v3737_v1, %s3416_s20  ;;  %v2200_v1 = vpop.permute.xlu1 %2199 }
0x154e   :  { %v2205_v34 = vsel %vm117_vm2, %v2200_v1, 0 }
0x1551   :  { %v2250_v41 = vpop.permute.xlu1 %2249 }
0x1552   :  { %v2255_v44 = vsel %vm117_vm2, %v2250_v41, 0 }
0x1555   :  { %v2248_v52 = vpop.permute.xlu1 %2247 }
0x15c0   :  { %v2040_v26 = vpop.xlane.xlu0 %2039 }
0x15c1   :  { %3332 = vrcp.f32 %v2040_v26 }
0x15c4   :  { %v2099_v29 = vpop.permute.xlu0 %2098 }
0x15c5   :  { %v2104_v30 = vsel %vm244_vm4, %v2099_v29, 0 }
0x15c6   :  { %3170 = vmatpush3.bf16.msra.mxu0 %v2104_v30 }
0x15c7   :  { %3181 = vmatprep.subr.bf16.mxu0 %v3405_v0 }
0x15c8   :  { %v2198_v36 = vpop.permute.xlu0 %2197 }
0x15c9   :  { %3172 = vmatmul.mubr.msk.bf16.vlgmr.msra.gmra.mrb[64].mxu0 %vm117_vm2, %v2049_v31 }
0x15ca   :  { %3183 = vmatprep.mubr.msk.bf16.mxu0 %vm3406_vm0, %v3405_v0 }
0x15cb   :  { %v3333_v32 = vpop.eup %3332 }
0x15cc   :  { %v2046_v33 = vmul.f32 %v3333_v32, %v3329_v20 }
0x15ce   :  { %v2048_v35 = vpack.c.bf16 %v2046_v33, %v2046_v33 }
0x15cf   :  { %3182 = vmatpush3.bf16.xpose.msra.mxu0 %v2205_v34 }
0x15d0   :  { %3166 = vmatmul.mubr.msk.bf16.vlgmr.msra.gmra.mrb[76].mxu1 %vm117_vm2, %v2048_v35  ;;  %3193 = vmatprep.subr.bf16.mxu0 %v3405_v0 }
0x15d1   :  { %3177 = vmatprep.mubr.msk.bf16.mxu1 %vm3406_vm0, %v3405_v0  ;;  %3176 = vmatpush3.bf16.msra.mxu1 %v2152_v25 }
0x15d2   :  { %3187 = vmatprep.subr.bf16.mxu1 %v3405_v0 }
0x15d6   :  { %3184 = vmatmul.mubr.msk.bf16.vlgmr.msra.gmra.mrb[68].mxu0 %vm117_vm2, %v2198_v36 }
0x15d7   :  { %3195 = vmatprep.mubr.msk.bf16.mxu0 %vm3406_vm0, %v3405_v0 }
0x169c   :  { %v2140_v38 = vpop.f32.mrb[64].mxu0 }
0x169d   :  { %v3173_v39 = vpop.f32.mrb[65].mxu0 }
0x169e   :  { %v2143_v28 = vpop.f32.mrb[66].mxu0  ;;  %v2828_v39 = vld [vmem:[%s3992_s4 + $0x4] ss:$0 sm:$0xff] }
0x169f   :  { %v3174_v40 = vpop.f32.mrb[67].mxu0 }
0x16a3   :  { %v2092_v22 = vpop.f32.mrb[76].mxu1 }
0x16a4   :  { %v2147_v42 = vpack.c.bf16 %v2140_v38, %v2092_v22  ;;  %v3167_v11 = vpop.f32.mrb[77].mxu1 }
0x16a5   :  { %v2095_v43 = vpop.f32.mrb[78].mxu1 }
0x16a6   :  { %v3168_v45 = vpop.f32.mrb[79].mxu1  ;;  %3178 = vmatmul.mubr.msk.bf16.vlgmr.msra.gmra.mrb[80].mxu1 %vm117_vm2, %v2147_v42 }
0x16a7   :  { %3188 = vmatpush3.bf16.xpose.msra.mxu1 %v2255_v44  ;;  %3189 = vmatprep.mubr.msk.bf16.mxu1 %vm3406_vm0, %v3405_v0 }
0x16a8   :  { %3199 = vmatprep.subr.bf16.mxu1 %v3405_v0 }
0x16a9   :  { %v2241_v48 = vpop.f32.mrb[68].mxu0 }
0x16aa   :  { %v3185_v49 = vpop.f32.mrb[69].mxu0  ;;  %v2297_v50 = vsel %vm117_vm2, %v2241_v48, -inf }
0x16ab   :  { %2298 = vmax.xlane.f32.xlu0 %v2297_v50  ;;  %v2244_v51 = vpop.f32.mrb[70].mxu0 }
0x16ac   :  { %v3186_v14 = vpop.f32.mrb[71].mxu0 }
0x16ae   :  { %3190 = vmatmul.mubr.msk.bf16.vlgmr.msra.gmra.mrb[84].mxu1 %vm117_vm2, %v2248_v52 }
0x16af   :  { %3201 = vmatprep.mubr.msk.bf16.mxu1 %vm3406_vm0, %v3405_v0 }
0x1738   :  { %v2299_v54 = vpop.xlane.xlu0 %2298 }
0x1739   :  { %v2303_v55 = vsub.f32 %v2241_v48, %v2299_v54  ;;  %v3264_v54 = vld [vmem:[#allocation2 + $0x14] ss:$24 sps:$4 sm:$0xff]  }
0x173b   :  { %v2305_v57 = vmul.f32 1.442695, %v2303_v55  ;;  %v3267_v55 = vld [vmem:[%s3991_s3 + $0x8] sm:$0xff]  }
0x173d   :  { %3334 = vpow2.f32 %v2305_v57 }
0x1747   :  { %v3335_v58 = vpop.eup %3334 }
0x1748   :  { %v2309_v59 = vsel %vm117_vm2, %v3335_v58, 0.0 }
0x1749   :  { %2310 = vadd.xlane.f32.xlu0 %v2309_v59 }
0x1779   :  { %v2188_v60 = vpop.f32.mrb[80].mxu1 }
0x177a   :  { %v2195_v61 = vadd.f32 %v2188_v60, %v3851_v5  ;;  %v3179_v62 = vpop.f32.mrb[81].mxu1 }
0x177b   :  { %v2191_v63 = vpop.f32.mrb[82].mxu1 }
0x177c   :  { %v2196_v2 = vadd.f32 %v2191_v63, %v3853_v9  ;;  %v3180_v7 = vpop.f32.mrb[83].mxu1 }
0x1781   :  { %v2291_v8 = vpop.f32.mrb[84].mxu1 }
0x1782   :  { %v3191_v10 = vpop.f32.mrb[85].mxu1  ;;  %v2300_v12 = vsel %vm117_vm2, %v2291_v8, -inf }
0x1783   :  { %2301 = vmax.xlane.f32.xlu1 %v2300_v12  ;;  %v2294_v6 = vpop.f32.mrb[86].mxu1 }
0x1784   :  { %v3192_v13 = vpop.f32.mrb[87].mxu1 }
0x1794   :  { %2321 = vrot.lane.b32.xlu1 %v3724_v53, %s3415_s19 }
0x17d6   :  { %v2311_v15 = vpop.xlane.xlu0 %2310 }
0x17d7   :  { %3336 = vrcp.f32 %v2311_v15 }
0x17e1   :  { %v3337_v16 = vpop.eup %3336 }
0x17e2   :  { %v2317_v18 = vmul.f32 %v3337_v16, %v3335_v58 }
0x17e4   :  { %v2319_v19 = vpack.c.bf16 %v2317_v18, %v2317_v18 }
0x1810   :  { %v2302_v17 = vpop.xlane.xlu1 %2301 }
0x1811   :  { %v2304_v5 = vsub.f32 %v2291_v8, %v2302_v17  ;;  %v2829_v17 = vld [vmem:[%s3992_s4 + $0x9] ss:$0 sm:$0xff] }
0x1813   :  { %v2307_v3 = vmul.f32 1.442695, %v2304_v5 }
0x1814   :  { %v2322_v4 = vpop.permute.xlu1 %2321 }
0x1815   :  { %3338 = vpow2.f32 %v2307_v3  ;;  %v2327_v9 = vsel %vm244_vm4, %v2322_v4, 0 }
0x1816   :  { %3194 = vmatpush3.bf16.msra.mxu0 %v2327_v9 }
0x1817   :  { %3205 = vmatprep.subr.bf16.mxu0 %v3405_v0 }
0x1819   :  { %3196 = vmatmul.mubr.msk.bf16.vlgmr.msra.gmra.mrb[72].mxu0 %vm117_vm2, %v2319_v19  ;;  %v2830_v19 = vld [vmem:[%s3992_s4 + $0xa] ss:$0 sm:$0xff] }
0x181a   :  { %3207 = vmatprep.mubr.msk.bf16.mxu0 %vm3406_vm0, %v3405_v0  ;;  %3206 = vmatpush3.bf16.msra.mxu0 %v2423_v23 }
0x181b   :  { %3219 = vmatprep.subr.bf16.mxu0 %v3405_v0 }
0x181f   :  { %v3339_v53 = vpop.eup %3338 }
0x1820   :  { %v2312_v20 = vsel %vm117_vm2, %v3339_v53, 0.0 }
0x1821   :  { %2313 = vadd.xlane.f32.xlu0 %v2312_v20 }
0x1837   :  { %2369 = vrot.lane.b32.xlu0 %v3726_v56, %s3415_s19 }
0x18ae   :  { %v2314_v24 = vpop.xlane.xlu0 %2313 }
0x18af   :  { %3340 = vrcp.f32 %v2314_v24  ;;  %v3268_v24 = vld [vmem:[%s3991_s3 + $0x10] sm:$0xff]  }
0x18b2   :  { %v2370_v26 = vpop.permute.xlu0 %2369 }
0x18b3   :  { %v2375_v27 = vsel %vm244_vm4, %v2370_v26, 0  ;;  %v3269_v26 = vld [vmem:[%s3991_s3 + $0x18] sm:$0xff]  }
0x18b4   :  { %3200 = vmatpush3.bf16.msra.mxu1 %v2375_v27  ;;  %v3270_v27 = vld [vmem:[%s3991_s3 + $0x20] sm:$0xff]  }
0x18b5   :  { %3211 = vmatprep.subr.bf16.mxu1 %v3405_v0 }
0x18b9   :  { %v3341_v29 = vpop.eup %3340 }
0x18ba   :  { %v2318_v30 = vmul.f32 %v3341_v29, %v3339_v53  ;;  %v3271_v29 = vld [vmem:[%s3991_s3 + $0x28] sm:$0xff]  }
0x18bc   :  { %v2320_v31 = vpack.c.bf16 %v2318_v30, %v2318_v30  ;;  %v3272_v30 = vld [vmem:[%s3991_s3 + $0x30] sm:$0xff]  }
0x18be   :  { %3202 = vmatmul.mubr.msk.bf16.vlgmr.msra.gmra.mrb[88].mxu1 %vm117_vm2, %v2320_v31  ;;  %v3273_v31 = vld [vmem:[%s3991_s3 + $0x38] sm:$0xff]  }
0x18bf   :  { %3215 = vmatprep.mubr.msk.bf16.mxu1 %vm3406_vm0, %v3405_v0  ;;  %3212 = vmatpush3.bf16.msra.mxu1 %v3264_v54 }
0x18c0   :  { %3213 = vmatprep.subr.bf16.mxu1 %v3405_v0 }
0x18ec   :  { %v2363_v56 = vpop.f32.mrb[72].mxu0 }
0x18ed   :  { %v3197_v32 = vpop.f32.mrb[73].mxu0 }
0x18ee   :  { %v2366_v1 = vpop.f32.mrb[74].mxu0 }
0x18ef   :  { %v3198_v33 = vpop.f32.mrb[75].mxu0 }
0x1991   :  { %v2411_v34 = vpop.f32.mrb[88].mxu1 }
0x1992   :  { %v2418_v35 = vpack.c.bf16 %v2411_v34, %v2363_v56  ;;  %v3203_v36 = vpop.f32.mrb[89].mxu1  ;;  %v2831_v56 = vld [vmem:[%s3992_s4 + $0x5] ss:$0 sm:$0xff] }
0x1993   :  { %v2414_v37 = vpop.f32.mrb[90].mxu1 }
0x1994   :  { %v3204_v25 = vpop.f32.mrb[91].mxu1  ;;  %3208 = vmatmul.mubr.msk.bf16.vlgmr.msra.gmra.mrb[76].mxu0 %vm117_vm2, %v2418_v35 }
0x1995   :  { %3235 = vmatprep.mubr.msk.bf16.mxu0 %vm3406_vm0, %v3405_v0 }
0x1a67   :  { %v2459_v38 = vpop.f32.mrb[76].mxu0 }
0x1a68   :  { %v2466_v28 = vadd.f32 %v2459_v38, %v2195_v61  ;;  %v3209_v40 = vpop.f32.mrb[77].mxu0 }
0x1a69   :  { %v2462_v41 = vpop.f32.mrb[78].mxu0 }
0x1a6a   :  { %v2473_v22 = vadd.f32 %v2828_v39, %v2466_v28  ;;  %v2467_v42 = vadd.f32 %v2462_v41, %v2196_v2  ;;  %v3210_v11 = vpop.f32.mrb[79].mxu0 }
0x1a6c   :  { %v2475_v43 = vadd.f32 %v2473_v22, %v3712_v46  ;;  %v2474_v44 = vadd.f32 %v2828_v39, %v2467_v42  ;;  %v3265_v46 = vld [vmem:[#allocation2 + $0x44] ss:$24 sps:$4 sm:$0xff]  }
0x1a6d   :  { %3214 = vmatpush3.bf16.msra.mxu1 %v3265_v46 }
0x1a6e   :  { %v2476_v45 = vadd.f32 %v2474_v44, %v3714_v47  ;;  %v2479_v48 = vsel %vm67_vm1, %v2475_v43, 0.0  ;;  %v2487_v49 = vmul.f32 %v2475_v43, %v2475_v43  ;;  %v3266_v47 = vld [vmem:[%s3991_s3] sm:$0xff]  }
0x1a6f   :  { %2480 = vadd.xlane.f32.xlu1 %v2479_v48  ;;  %3220 = vmatpush3.bf16.msra.mxu0 %v3266_v47 }
0x1a70   :  { %v2482_v50 = vsel %vm67_vm1, %v2476_v45, 0.0  ;;  %v2488_v51 = vmul.f32 %v2476_v45, %v2476_v45  ;;  %v2489_v14 = vsel %vm67_vm1, %v2487_v49, 0.0  ;;  %3221 = vmatprep.subr.bf16.mxu0 %v3405_v0 }
0x1a71   :  { %2483 = vadd.xlane.f32.xlu0 %v2482_v50 }
0x1a72   :  { %v2492_v52 = vsel %vm67_vm1, %v2488_v51, 0.0 }
0x1a73   :  { %2490 = vadd.xlane.f32.xlu1 %v2489_v14  ;;  %3222 = vmatpush3.bf16.msra.mxu0 %v3267_v55 }
0x1a74   :  { %3223 = vmatprep.subr.bf16.mxu0 %v3405_v0 }
0x1a75   :  { %2493 = vadd.xlane.f32.xlu0 %v2492_v52 }
0x1a77   :  { %3224 = vmatpush3.bf16.msra.mxu0 %v3268_v24 }
0x1a78   :  { %3225 = vmatprep.subr.bf16.mxu0 %v3405_v0 }
0x1a7b   :  { %3226 = vmatpush3.bf16.msra.mxu0 %v3269_v26 }
0x1a7c   :  { %3227 = vmatprep.subr.bf16.mxu0 %v3405_v0 }
0x1a7f   :  { %3228 = vmatpush3.bf16.msra.mxu0 %v3270_v27 }
0x1a80   :  { %3229 = vmatprep.subr.bf16.mxu0 %v3405_v0 }
0x1a83   :  { %3230 = vmatpush3.bf16.msra.mxu0 %v3271_v29 }
0x1a84   :  { %3231 = vmatprep.subr.bf16.mxu0 %v3405_v0 }
0x1a87   :  { %3232 = vmatpush3.bf16.msra.mxu0 %v3272_v30 }
0x1a88   :  { %3233 = vmatprep.subr.bf16.mxu0 %v3405_v0 }
0x1a8b   :  { %3234 = vmatpush3.bf16.msra.mxu0 %v3273_v31 }
0x1afc   :  { %v2481_v57 = vpop.xlane.xlu1 %2480 }
0x1afd   :  { %v2485_v58 = vmul.f32 0.03125, %v2481_v57 }
0x1afe   :  { %v2484_v59 = vpop.xlane.xlu0 %2483 }
0x1aff   :  { %v2486_v60 = vmul.f32 0.03125, %v2484_v59  ;;  %v2497_v62 = vmul.f32 %v2485_v58, %v2485_v58  ;;  %v2501_v15 = vsub.f32 %v2475_v43, %v2485_v58  ;;  %v2835_v43 = vld [vmem:[%s3992_s4 + $0x6] ss:$0 sm:$0xff] }
0x1b00   :  { %v2491_v61 = vpop.xlane.xlu1 %2490 }
0x1b01   :  { %v2495_v63 = vmul.f32 0.03125, %v2491_v61  ;;  %v2498_v7 = vmul.f32 %v2486_v60, %v2486_v60  ;;  %v2502_v5 = vsub.f32 %v2476_v45, %v2486_v60 }
0x1b02   :  { %v2494_v2 = vpop.xlane.xlu0 %2493 }
0x1b03   :  { %v2499_v8 = vsub.f32 %v2495_v63, %v2497_v62  ;;  %v2496_v10 = vmul.f32 0.03125, %v2494_v2 }
0x1b05   :  { %v2503_v12 = vadd.f32 1e-05, %v2499_v8  ;;  %v2500_v6 = vsub.f32 %v2496_v10, %v2498_v7 }
0x1b07   :  { %3342 = vrsqrt.f32 %v2503_v12  ;;  %v2504_v13 = vadd.f32 1e-05, %v2500_v6 }
0x1b09   :  { %3344 = vrsqrt.f32 %v2504_v13 }
0x1b11   :  { %v3343_v16 = vpop.eup %3342 }
0x1b12   :  { %v2507_v18 = vmul.f32 %v3343_v16, %v2501_v15 }
0x1b13   :  { %v3345_v3 = vpop.eup %3344 }
0x1b14   :  { %v2508_v4 = vmul.f32 %v3345_v3, %v2502_v5  ;;  %v2513_v9 = vmul.f32 %v2829_v17, %v2507_v18  ;;  %v2844_v18 = vld [vmem:[%s3992_s4 + $0xb] ss:$0 sm:$0xff] }
0x1b16   :  { %v2514_v53 = vmul.f32 %v2829_v17, %v2508_v4  ;;  %v2519_v20 = vadd.f32 %v2830_v19, %v2513_v9 }
0x1b18   :  { %v2520_v21 = vadd.f32 %v2830_v19, %v2514_v53  ;;  %v2845_v19 = vld [vmem:[%s3992_s4 + $0xc] ss:$0 sm:$0xff] }
0x1b1a   :  { %v2521_v23 = vpack.c.bf16 %v2520_v21, %v2519_v20 }
0x1b1c   :  { %3216 = vmatmul.mubr.msk.bf16.vlgmr.msra.gmra.mrb[92].mxu1 %vm67_vm1, %v2521_v23 }
0x1bef   :  { %v2580_v32 = vpop.f32.mrb[92].mxu1 }
0x1bf0   :  { %v2581_v1 = vadd.f32 %v2831_v56, %v2580_v32  ;;  %v3217_v33 = vpop.f32.mrb[93].mxu1 }
0x1bf1   :  { %v2583_v34 = vpop.f32.mrb[94].mxu1 }
0x1bf2   :  { %v2589_v35 = vmul.f32 0.70710677, %v2581_v1  ;;  %v2584_v36 = vadd.f32 %v2831_v56, %v2583_v34  ;;  %v3218_v37 = vpop.f32.mrb[95].mxu1  ;;  %v2587_v28 = vmul.f32 0.5, %v2581_v1 }
0x1bf4   :  { %3346 = verf.f32 %v2589_v35  ;;  %v2590_v25 = vmul.f32 0.70710677, %v2584_v36  ;;  %v2588_v40 = vmul.f32 0.5, %v2584_v36 }
0x1bf6   :  { %3348 = verf.f32 %v2590_v25 }
0x1bfe   :  { %v3347_v0 = vpop.eup %3346 }
0x1bff   :  { %v2593_v38 = vadd.f32 1.0, %v3347_v0 }
0x1c00   :  { %v3349_v39 = vpop.eup %3348 }
0x1c01   :  { %v2594_v41 = vadd.f32 1.0, %v3349_v39  ;;  %v2595_v22 = vmul.f32 %v2593_v38, %v2587_v28 }
0x1c03   :  { %v2596_v42 = vmul.f32 %v2594_v41, %v2588_v40 }
0x1c05   :  { %v2597_v11 = vpack.c.bf16 %v2596_v42, %v2595_v22 }
0x1c07   :  { %3236 = vmatmul.mubr.bf16.vlgmr.msra.gmra.mrb[80].mxu0 %v2597_v11 }
0x1cda   :  { %v2701_v44 = vpop.f32.mrb[80].mxu0 }
0x1cdb   :  { %v2702_v45 = vadd.f32 %v2835_v43, %v2701_v44  ;;  %v3237_v48 = vpop.f32.mrb[81].mxu0 }
0x1cdc   :  { %v2704_v49 = vpop.f32.mrb[82].mxu0 }
0x1cdd   :  { %v2708_v50 = vadd.f32 %v2702_v45, %v2519_v20  ;;  %v2705_v51 = vadd.f32 %v2835_v43, %v2704_v49  ;;  %v3238_v14 = vpop.f32.mrb[83].mxu0 }
0x1cdf   :  { %v2709_v52 = vadd.f32 %v2705_v51, %v2520_v21  ;;  %v2712_v54 = vsel %vm67_vm1, %v2708_v50, 0.0  ;;  %v2720_v46 = vmul.f32 %v2708_v50, %v2708_v50 }
0x1ce0   :  { %2713 = vadd.xlane.f32.xlu1 %v2712_v54 }
0x1ce1   :  { %v2715_v47 = vsel %vm67_vm1, %v2709_v52, 0.0  ;;  %v2721_v55 = vmul.f32 %v2709_v52, %v2709_v52  ;;  %v2722_v57 = vsel %vm67_vm1, %v2720_v46, 0.0 }
0x1ce2   :  { %2716 = vadd.xlane.f32.xlu0 %v2715_v47 }
0x1ce3   :  { %v2725_v58 = vsel %vm67_vm1, %v2721_v55, 0.0 }
0x1ce4   :  { %2723 = vadd.xlane.f32.xlu1 %v2722_v57 }
0x1ce6   :  { %2726 = vadd.xlane.f32.xlu0 %v2725_v58 }
0x1d6d   :  { %v2714_v59 = vpop.xlane.xlu1 %2713 }
0x1d6e   :  { %v2718_v60 = vmul.f32 0.03125, %v2714_v59 }
0x1d6f   :  { %v2717_v61 = vpop.xlane.xlu0 %2716 }
0x1d70   :  { %v2719_v62 = vmul.f32 0.03125, %v2717_v61  ;;  %v2730_v2 = vmul.f32 %v2718_v60, %v2718_v60  ;;  %v2734_v17 = vsub.f32 %v2708_v50, %v2718_v60 }
0x1d71   :  { %v2724_v63 = vpop.xlane.xlu1 %2723 }
0x1d72   :  { %v2728_v7 = vmul.f32 0.03125, %v2724_v63  ;;  %v2731_v10 = vmul.f32 %v2719_v62, %v2719_v62  ;;  %v2735_v3 = vsub.f32 %v2709_v52, %v2719_v62 }
0x1d73   :  { %v2727_v8 = vpop.xlane.xlu0 %2726 }
0x1d74   :  { %v2732_v12 = vsub.f32 %v2728_v7, %v2730_v2  ;;  %v2729_v6 = vmul.f32 0.03125, %v2727_v8 }
0x1d76   :  { %v2736_v13 = vadd.f32 1e-05, %v2732_v12  ;;  %v2733_v15 = vsub.f32 %v2729_v6, %v2731_v10 }
0x1d78   :  { %3350 = vrsqrt.f32 %v2736_v13  ;;  %v2737_v16 = vadd.f32 1e-05, %v2733_v15 }
0x1d7a   :  { %3352 = vrsqrt.f32 %v2737_v16 }
0x1d82   :  { %v3351_v5 = vpop.eup %3350 }
0x1d83   :  { %v2740_v4 = vmul.f32 %v3351_v5, %v2734_v17 }
0x1d84   :  { %v3353_v9 = vpop.eup %3352 }
0x1d85   :  { %v2741_v53 = vmul.f32 %v3353_v9, %v2735_v3  ;;  %v2746_v20 = vmul.f32 %v2844_v18, %v2740_v4 }
0x1d87   :  { %v2747_v21 = vmul.f32 %v2844_v18, %v2741_v53  ;;  %v2752_v23 = vadd.f32 %v2845_v19, %v2746_v20 }
0x1d89   :  { %v2753_v24 = vadd.f32 %v2845_v19, %v2747_v21  ;;  %2754 = vst.msk [vmem:[#allocation5] sm:$0xff] %vm67_vm1, %v2752_v23 }
0x1d8b   :  { %2755 = vst.msk [vmem:[#allocation5 + $0x8] sm:$0xff] %vm67_vm1, %v2753_v24 }
0x1d8c   :  { %3387 = shalt.err (!%p3384_p12)
}
0x1d8d   :  { %s3388_s13 = scalar_lea.hbm %s3993_s5, 256 }
0x1d8e   :  { %p3389_p13 = scmp.ne.s32.totalorder %s3993_s5, %s3388_s13  ;;  %p3392_p0 = scmp.lt.u32.totalorder %s3388_s13, %s3993_s5 }
0x1d90   :  { %p3394_p1 = pnand %p3392_p0, %p3389_p13 }
0x1d92   :  { %3397 = shalt.err (!%p3394_p1)
}
0x1d93   :  { %s3419_s18 = smov 128   ;;  %s3420_s19 = smov 8  }
0x1d94   :  { %2767 = dma.vmem_to_hbm [thread:$0]  %s2762_s11, 256, %s3993_s5, [#allocation4], %s3419_s18, %s3419_s18, %s3420_s19  }
0x1d95   :  { %3400 = dma.done.wait [#allocation4], 256  }
0x1d96   :  { %3401 = vsyncadd [#allocation4], 4294967040 }
0x1d97   :  { %2771 = vsyncpa [#allocation3], 1 }
0x1d98   :  { %2772 = vsyncpa [#allocation4], 1 }

</bundles_post_ra>
